<compile_context>
chip_gen: v5e
topology: v5e:2x2
jax: 0.10.0
libtpu: 0.0.40
codegen_flags: <defaults>
</compile_context>

<pallas_src>
import functools
import math

import jax
import jax.numpy as jnp
from jax import lax
from jax.experimental import pallas as pl
from jax.experimental.pallas import tpu as pltpu


def _cdiv(a, b):
    return (a + b - 1) // b


def _round_up(x, m):
    return ((x + m - 1) // m) * m


# ---------------------------------------------------------------------------
# Kernel
# ---------------------------------------------------------------------------
def _rotate_fused_kernel(head_idx, tail_idx,             # scalar prefetch (SMEM)
                         node_hbm,                        # packed node table (HBM)
                         *rest,
                         bb, n_sub, batch, d_pad, num_rel, rel_in_vmem):
    if rel_in_vmem:
        rel_cs, rel_ids, out_ref, head_buf, tail_buf, sems = rest
    else:
        rel_rows, out_ref, head_buf, tail_buf, sems = rest

    row0 = pl.program_id(0) * (n_sub * bb)

    def issue(sub, slot):
        """Start per-row gather DMAs for one sub-block into buffer `slot`.

        INVARIANT: all `bb` rows are always issued (padding rows are clamped
        to a valid row), so the whole-buffer wait below sees exactly
        bb * row_bytes on each semaphore.
        """
        base = row0 + sub * bb

        def body(r, c):
            g = jnp.minimum(base + r, batch - 1)          # clamp padding rows
            pltpu.make_async_copy(node_hbm.at[head_idx[g]], head_buf.at[slot, r],
                                  sems.at[0, slot]).start()
            pltpu.make_async_copy(node_hbm.at[tail_idx[g]], tail_buf.at[slot, r],
                                  sems.at[1, slot]).start()
            return c

        lax.fori_loop(0, bb, body, 0, unroll=min(8, bb))

    def wait(slot):
        # One wait per stream per slot: the descriptor spans the whole
        # (bb, 2*d_pad) buffer, i.e. exactly the bytes of the bb issued rows.
        pltpu.make_async_copy(node_hbm.at[pl.ds(0, bb)], head_buf.at[slot],
                              sems.at[0, slot]).wait()
        pltpu.make_async_copy(node_hbm.at[pl.ds(0, bb)], tail_buf.at[slot],
                              sems.at[1, slot]).wait()

    if rel_in_vmem:
        rel_tab = rel_cs[...]                             # hoisted out of the loop

    # Prime the pipeline, then process sub-blocks with double-buffered gather.
    issue(0, 0)
    for s in range(n_sub):                                # static (n_sub small)
        slot = s % 2
        if s + 1 < n_sub:
            issue(s + 1, 1 - slot)                        # overlap next gather
        wait(slot)

        head = head_buf[slot]                             # [bb, 2*d_pad]  (re | im)
        tail = tail_buf[slot]                             # [bb, 2*d_pad]  (re | im)
        if rel_in_vmem:
            # Relation "gather" via one-hot MXU matmul (exact with HIGHEST).
            ids = rel_ids[s * bb:(s + 1) * bb, :]         # [bb, 1] int32
            onehot = (ids == lax.broadcasted_iota(jnp.int32, (bb, num_rel), 1)
                      ).astype(jnp.float32)
            rcs = jnp.dot(onehot, rel_tab,
                          precision=jax.lax.Precision.HIGHEST,
                          preferred_element_type=jnp.float32)
        else:
            rcs = rel_rows[s * bb:(s + 1) * bb, :]        # pre-gathered rows

        hr, hi = head[:, :d_pad], head[:, d_pad:]
        tr, ti = tail[:, :d_pad], tail[:, d_pad:]
        rr, ri = rcs[:, :d_pad], rcs[:, d_pad:]

        re_s = rr * hr - ri * hi - tr
        im_s = rr * hi + ri * hr - ti
        score = jnp.sqrt(jnp.sum(re_s * re_s + im_s * im_s, axis=-1))   # [bb]
        # Lane-dense store: (bb,) -> (1, bb) slice of the output row.
        out_ref[:, s * bb:(s + 1) * bb] = (-score)[None, :]


# ---------------------------------------------------------------------------
# Planning helpers (generation-aware tiling)
# ---------------------------------------------------------------------------
def _vmem_capacity_bytes():
    try:
        info = pltpu.get_tpu_info()
        for name in ("vmem_capacity_bytes", "vmem_bytes", "vmem_size_bytes"):
            v = getattr(info, name, None)
            if v:
                return int(v)
    except Exception:
        pass
    # Fallback: infer from device_kind so v5e/v6e get their full 128 MiB.
    try:
        kind = jax.devices()[0].device_kind.lower()
    except Exception:
        kind = ""
    if "v7" in kind:
        return 64 * 1024 * 1024
    if any(t in kind for t in ("v4", "v5", "v6", "trillium")):
        return 128 * 1024 * 1024
    return 64 * 1024 * 1024          # conservative default


def _plan(batch, d_pad, vmem_limit, rel_in_vmem, table_bytes):
    """Pick (rows-per-sub-block, sub-blocks, grid steps, rows-per-step)."""
    row_bytes = 2 * d_pad * 4
    streams = 2 if rel_in_vmem else 3         # head/tail scratch (+ rel block input)
    per_row = streams * 2 * row_bytes         # double-buffered
    resident = (2 * table_bytes if rel_in_vmem else 0) + (6 << 20)
    avail = max(vmem_limit - resident, per_row * 16)
    bb_cap = int(min(max(avail // (2 * per_row), 32), 512))

    if batch <= 64:
        # Tiny problem: single step, single sub-block, no padding games.
        return batch, 1, 1, batch

    n_sub = 4                                 # amortize priming gather to 1/4
    min_steps = 2 if batch > 256 else 1       # give both v7x TCs work
    steps = max(min_steps, _cdiv(batch, bb_cap * n_sub))
    if steps > 1 and steps % 2:
        steps += 1                            # even step count for megacore balance

    if steps == 1:
        super_b = _round_up(batch, 8 * n_sub)
        bb = super_b // n_sub
        return bb, n_sub, 1, super_b

    # Multi-step: the output block's lane dim must be a multiple of 128.
    super_b = _round_up(_cdiv(batch, steps), 128)
    bb = super_b // n_sub
    while bb > bb_cap:                        # shrink block if scratch would not fit
        steps += 2
        super_b = _round_up(_cdiv(batch, steps), 128)
        bb = super_b // n_sub
    num_super = _cdiv(batch, super_b)
    return bb, n_sub, num_super, super_b


# ---------------------------------------------------------------------------
# Wrapper
# ---------------------------------------------------------------------------
def rotate_score(node_packed, rel_cos_sin, head_index, rel_type, tail_index):
    """Fused Pallas RotatE scoring.

    node_packed : [num_nodes, 2*D_pad] f32, lane-aligned (re | im) embeddings.
    rel_cos_sin : [num_relations, 2*D_pad] f32, lane-aligned (cos | sin).
    indices     : [B] integer arrays.
    Returns [B] f32 scores (= -||e_h o e_r - e_t||_2).
    """
    _, two_d_pad = node_packed.shape
    d_pad = two_d_pad // 2
    num_rel = int(rel_cos_sin.shape[0])
    B = int(head_index.shape[0])

    vmem_cap = _vmem_capacity_bytes()
    vmem_limit = int(min((vmem_cap * 3) // 4, 112 * 1024 * 1024))
    table_bytes = num_rel * two_d_pad * 4
    # Keep the full (cos | sin) table VMEM-resident only if it (double
    # buffered) uses at most ~1/3 of the budget; otherwise pre-gather rows.
    rel_in_vmem = (2 * table_bytes) <= (vmem_limit // 3)

    bb, n_sub, num_super, super_b = _plan(B, d_pad, vmem_limit,
                                          rel_in_vmem, table_bytes)
    out_cols = num_super * super_b

    head_i = head_index.astype(jnp.int32)
    tail_i = tail_index.astype(jnp.int32)
    rel_pad = jnp.pad(rel_type.astype(jnp.int32), (0, out_cols - B))

    kernel = functools.partial(
        _rotate_fused_kernel, bb=bb, n_sub=n_sub, batch=B, d_pad=d_pad,
        num_rel=num_rel, rel_in_vmem=rel_in_vmem)

    in_specs = [pl.BlockSpec(memory_space=pl.ANY)]          # node table stays in HBM
    operands = [node_packed]
    if rel_in_vmem:
        in_specs.append(pl.BlockSpec(rel_cos_sin.shape, lambda i, h, t: (0, 0)))
        in_specs.append(pl.BlockSpec((super_b, 1), lambda i, h, t: (i, 0)))
        operands += [rel_cos_sin, rel_pad.reshape(out_cols, 1)]
    else:
        # TODO(synk): fully-fused HBM gather of relation rows (same per-row
        # DMA path as head/tail) would avoid this [out_cols, 2*D_pad]
        # intermediate; only hit for very large relation vocabularies.
        rel_rows = jnp.take(rel_cos_sin, rel_pad, axis=0)
        in_specs.append(pl.BlockSpec((super_b, two_d_pad), lambda i, h, t: (i, 0)))
        operands.append(rel_rows)

    grid_spec = pltpu.PrefetchScalarGridSpec(
        num_scalar_prefetch=2,                              # head / tail indices -> SMEM
        grid=(num_super,),
        in_specs=in_specs,
        out_specs=pl.BlockSpec((1, super_b), lambda i, h, t: (0, i)),
        scratch_shapes=[
            pltpu.VMEM((2, bb, two_d_pad), jnp.float32),    # gathered head rows
            pltpu.VMEM((2, bb, two_d_pad), jnp.float32),    # gathered tail rows
            pltpu.SemaphoreType.DMA((2, 2)),                # (stream, slot)
        ],
    )

    out = pl.pallas_call(
        kernel,
        out_shape=jax.ShapeDtypeStruct((1, out_cols), jnp.float32),
        grid_spec=grid_spec,
        compiler_params=pltpu.CompilerParams(
            dimension_semantics=("parallel",),
            vmem_limit_bytes=vmem_limit,
        ),
    )(head_i, tail_i, *operands)

    return out[0, :B]


# ---------------------------------------------------------------------------
# Model (parameters as JAX arrays, forward via the fused kernel)
# ---------------------------------------------------------------------------
class RotatEPallas:
    def __init__(self, num_nodes, num_relations, hidden_channels, key):
        self.num_nodes = num_nodes
        self.num_relations = num_relations
        self.hidden_channels = hidden_channels
        self.d_pad = _round_up(hidden_channels, 128)   # lane-aligned halves

        k_re, k_im, k_rel = jax.random.split(key, 3)
        # torch.nn.init.xavier_uniform_ on (num_nodes, hidden):
        bound = math.sqrt(6.0 / (hidden_channels + num_nodes))
        self.node_emb = jax.random.uniform(
            k_re, (num_nodes, hidden_channels), jnp.float32, -bound, bound)
        self.node_emb_im = jax.random.uniform(
            k_im, (num_nodes, hidden_channels), jnp.float32, -bound, bound)
        # torch.nn.init.uniform_(rel_emb.weight, 0, 2*pi)
        self.rel_emb = jax.random.uniform(
            k_rel, (num_relations, hidden_channels), jnp.float32,
            0.0, 2.0 * math.pi)

        # Packed, lane-aligned (re | im) node table; zero padding contributes
        # exactly 0 to the squared norm, so semantics are unchanged.
        node_packed = jnp.zeros((num_nodes, 2 * self.d_pad), jnp.float32)
        node_packed = node_packed.at[:, :hidden_channels].set(self.node_emb)
        node_packed = node_packed.at[:, self.d_pad:self.d_pad + hidden_channels].set(
            self.node_emb_im)
        self.node_packed = node_packed

    def __call__(self, head_index, rel_type, tail_index):
        # cos/sin hoisted off the per-triplet path: computed once on the tiny
        # [num_relations, D] table, padded lanes are zero (safe: head/tail
        # padded lanes are zero too, so padded contributions vanish).
        cos = jnp.cos(self.rel_emb)
        sin = jnp.sin(self.rel_emb)
        rel_cs = jnp.zeros((self.num_relations, 2 * self.d_pad), jnp.float32)
        rel_cs = rel_cs.at[:, :self.hidden_channels].set(cos)
        rel_cs = rel_cs.at[:, self.d_pad:self.d_pad + self.hidden_channels].set(sin)
        return rotate_score(self.node_packed, rel_cs,
                            head_index, rel_type, tail_index)


def _reference_score(model, head_index, rel_type, tail_index):
    """Pure-JAX reference matching the PyTorch forward exactly."""
    head_re = jnp.take(model.node_emb, head_index, axis=0)
    head_im = jnp.take(model.node_emb_im, head_index, axis=0)
    tail_re = jnp.take(model.node_emb, tail_index, axis=0)
    tail_im = jnp.take(model.node_emb_im, tail_index, axis=0)
    rel_theta = jnp.take(model.rel_emb, rel_type, axis=0)
    rel_re, rel_im = jnp.cos(rel_theta), jnp.sin(rel_theta)
    re_score = rel_re * head_re - rel_im * head_im - tail_re
    im_score = rel_re * head_im + rel_im * head_re - tail_im
    complex_score = jnp.stack([re_score, im_score], axis=2)   # [B, D, 2]
    score = jnp.sqrt(jnp.sum(complex_score ** 2, axis=(1, 2)))
    return -score


if __name__ == "__main__":
    key = jax.random.PRNGKey(0)
    (k_m1, k_h1, k_r1, k_t1, k_m2, k_h2, k_r2, k_t2) = jax.random.split(key, 8)

    # --- tiny demo shapes (single grid step, single sub-block) ---
    num_nodes, num_relations, hidden, batch = 64, 8, 32, 8
    model = RotatEPallas(num_nodes, num_relations, hidden, k_m1)
    head = jax.random.randint(k_h1, (batch,), 0, num_nodes, dtype=jnp.int32)
    rel = jax.random.randint(k_r1, (batch,), 0, num_relations, dtype=jnp.int32)
    tail = jax.random.randint(k_t1, (batch,), 0, num_nodes, dtype=jnp.int32)

    out = jax.block_until_ready(model(head, rel, tail))
    ref = jax.block_until_ready(_reference_score(model, head, rel, tail))
    assert out.shape == (batch,)
    assert jnp.allclose(out, ref, atol=1e-5, rtol=1e-5), (out, ref)

    # --- larger batch: multi-step, 4-deep sub-blocked, double-buffered gather ---
    num_nodes2, num_relations2, hidden2, batch2 = 500, 11, 32, 600
    model2 = RotatEPallas(num_nodes2, num_relations2, hidden2, k_m2)
    head2 = jax.random.randint(k_h2, (batch2,), 0, num_nodes2, dtype=jnp.int32)
    rel2 = jax.random.randint(k_r2, (batch2,), 0, num_relations2, dtype=jnp.int32)
    tail2 = jax.random.randint(k_t2, (batch2,), 0, num_nodes2, dtype=jnp.int32)

    out2 = jax.block_until_ready(model2(head2, rel2, tail2))
    ref2 = jax.block_until_ready(_reference_score(model2, head2, rel2, tail2))
    assert out2.shape == (batch2,)
    assert jnp.allclose(out2, ref2, atol=1e-4, rtol=1e-5), (
        float(jnp.max(jnp.abs(out2 - ref2))))

    print("KERNEL_OK")
</pallas_src>

<mosaic_0001>
module attributes {stable_mosaic.version = 11 : i64} {
  func.func @_rotate_fused_kernel(%arg0: i32, %arg1: memref<8xi32, #tpu.memory_space<smem>>, %arg2: memref<8xi32, #tpu.memory_space<smem>>, %arg3: memref<64x256xf32, #tpu.memory_space<any>>, %arg4: memref<8x256xf32, #tpu.memory_space<vmem>>, %arg5: memref<8x1xi32, #tpu.memory_space<vmem>>, %arg6: memref<1x8xf32, #tpu.memory_space<vmem>>, %arg7: memref<2x8x256xf32, #tpu.memory_space<vmem>>, %arg8: memref<2x8x256xf32, #tpu.memory_space<vmem>>, %arg9: memref<2x2x!tpu.dma_semaphore, #tpu.memory_space<semaphore_mem>>) attributes {dimension_semantics = [#tpu.dimension_semantics<parallel>], iteration_bounds = array<i64: 1>, scalar_prefetch = 2 : i64, scratch_operands = 3 : i64, tpu.core_type = #tpu.core_type<tc>, window_params = [{}, {pipeline_mode = #tpu.pipeline_mode<synchronous>, transform_indices = @transform_1, window_bounds = array<i64: 8, 256>}, {transform_indices = @transform_2, window_bounds = array<i64: 8, 1>}, {transform_indices = @transform_3, window_bounds = array<i64: 1, 8>}]} {
    %c8_i32 = arith.constant 8 : i32
    %0 = arith.muli %arg0, %c8_i32 : i32
    %c0 = arith.constant 0 : index
    %c0_0 = arith.constant 0 : index
    %1 = vector.load %arg4[%c0, %c0_0] : memref<8x256xf32, #tpu.memory_space<vmem>>, vector<8x256xf32>
    %c0_i32 = arith.constant 0 : i32
    %2 = arith.addi %0, %c0_i32 : i32
    %c0_i32_1 = arith.constant 0 : i32
    %3 = arith.addi %2, %c0_i32_1 : i32
    %c7_i32 = arith.constant 7 : i32
    %4 = arith.minsi %3, %c7_i32 : i32
    %5 = arith.index_cast %4 : i32 to index
    %6 = memref.load %arg1[%5] : memref<8xi32, #tpu.memory_space<smem>>
    %c0_i32_2 = arith.constant 0 : i32
    %c0_i32_3 = arith.constant 0 : i32
    %c0_i32_4 = arith.constant 0 : i32
    %c0_i32_5 = arith.constant 0 : i32
    %7 = tpu.memref_slice %arg3[%6, %c0_i32_5] : memref<64x256xf32, #tpu.memory_space<any>> -> memref<1x256xf32, #tpu.memory_space<any>>
    %8 = tpu.memref_squeeze %7 : memref<1x256xf32, #tpu.memory_space<any>> -> memref<256xf32, #tpu.memory_space<any>>
    %c0_i32_6 = arith.constant 0 : i32
    %9 = tpu.memref_slice %arg7[%c0_i32_2, %c0_i32_1, %c0_i32_6] : memref<2x8x256xf32, #tpu.memory_space<vmem>> -> memref<1x1x256xf32, #tpu.memory_space<vmem>>
    %10 = tpu.memref_squeeze %9 : memref<1x1x256xf32, #tpu.memory_space<vmem>> -> memref<256xf32, #tpu.memory_space<vmem>>
    %11 = tpu.memref_slice %arg9[%c0_i32_3, %c0_i32_4] : memref<2x2x!tpu.dma_semaphore, #tpu.memory_space<semaphore_mem>> -> memref<1x1x!tpu.dma_semaphore, #tpu.memory_space<semaphore_mem>>
    %12 = tpu.memref_squeeze %11 : memref<1x1x!tpu.dma_semaphore, #tpu.memory_space<semaphore_mem>> -> memref<!tpu.dma_semaphore, #tpu.memory_space<semaphore_mem>>
    tpu.enqueue_dma source(%8 : memref<256xf32, #tpu.memory_space<any>>) target(%10 : memref<256xf32, #tpu.memory_space<vmem>>) target_semaphore(%12 : memref<!tpu.dma_semaphore, #tpu.memory_space<semaphore_mem>>)
    %13 = arith.index_cast %4 : i32 to index
    %14 = memref.load %arg2[%13] : memref<8xi32, #tpu.memory_space<smem>>
    %c0_i32_7 = arith.constant 0 : i32
    %c1_i32 = arith.constant 1 : i32
    %c0_i32_8 = arith.constant 0 : i32
    %c0_i32_9 = arith.constant 0 : i32
    %15 = tpu.memref_slice %arg3[%14, %c0_i32_9] : memref<64x256xf32, #tpu.memory_space<any>> -> memref<1x256xf32, #tpu.memory_space<any>>
    %16 = tpu.memref_squeeze %15 : memref<1x256xf32, #tpu.memory_space<any>> -> memref<256xf32, #tpu.memory_space<any>>
    %c0_i32_10 = arith.constant 0 : i32
    %17 = tpu.memref_slice %arg8[%c0_i32_7, %c0_i32_1, %c0_i32_10] : memref<2x8x256xf32, #tpu.memory_space<vmem>> -> memref<1x1x256xf32, #tpu.memory_space<vmem>>
    %18 = tpu.memref_squeeze %17 : memref<1x1x256xf32, #tpu.memory_space<vmem>> -> memref<256xf32, #tpu.memory_space<vmem>>
    %19 = tpu.memref_slice %arg9[%c1_i32, %c0_i32_8] : memref<2x2x!tpu.dma_semaphore, #tpu.memory_space<semaphore_mem>> -> memref<1x1x!tpu.dma_semaphore, #tpu.memory_space<semaphore_mem>>
    %20 = tpu.memref_squeeze %19 : memref<1x1x!tpu.dma_semaphore, #tpu.memory_space<semaphore_mem>> -> memref<!tpu.dma_semaphore, #tpu.memory_space<semaphore_mem>>
    tpu.enqueue_dma source(%16 : memref<256xf32, #tpu.memory_space<any>>) target(%18 : memref<256xf32, #tpu.memory_space<vmem>>) target_semaphore(%20 : memref<!tpu.dma_semaphore, #tpu.memory_space<semaphore_mem>>)
    %c1_i32_11 = arith.constant 1 : i32
    %21 = arith.addi %2, %c1_i32_11 : i32
    %c7_i32_12 = arith.constant 7 : i32
    %22 = arith.minsi %21, %c7_i32_12 : i32
    %23 = arith.index_cast %22 : i32 to index
    %24 = memref.load %arg1[%23] : memref<8xi32, #tpu.memory_space<smem>>
    %c0_i32_13 = arith.constant 0 : i32
    %c0_i32_14 = arith.constant 0 : i32
    %c0_i32_15 = arith.constant 0 : i32
    %c0_i32_16 = arith.constant 0 : i32
    %25 = tpu.memref_slice %arg3[%24, %c0_i32_16] : memref<64x256xf32, #tpu.memory_space<any>> -> memref<1x256xf32, #tpu.memory_space<any>>
    %26 = tpu.memref_squeeze %25 : memref<1x256xf32, #tpu.memory_space<any>> -> memref<256xf32, #tpu.memory_space<any>>
    %c0_i32_17 = arith.constant 0 : i32
    %27 = tpu.memref_slice %arg7[%c0_i32_13, %c1_i32_11, %c0_i32_17] : memref<2x8x256xf32, #tpu.memory_space<vmem>> -> memref<1x1x256xf32, #tpu.memory_space<vmem>>
    %28 = tpu.memref_squeeze %27 : memref<1x1x256xf32, #tpu.memory_space<vmem>> -> memref<256xf32, #tpu.memory_space<vmem>>
    %29 = tpu.memref_slice %arg9[%c0_i32_14, %c0_i32_15] : memref<2x2x!tpu.dma_semaphore, #tpu.memory_space<semaphore_mem>> -> memref<1x1x!tpu.dma_semaphore, #tpu.memory_space<semaphore_mem>>
    %30 = tpu.memref_squeeze %29 : memref<1x1x!tpu.dma_semaphore, #tpu.memory_space<semaphore_mem>> -> memref<!tpu.dma_semaphore, #tpu.memory_space<semaphore_mem>>
    tpu.enqueue_dma source(%26 : memref<256xf32, #tpu.memory_space<any>>) target(%28 : memref<256xf32, #tpu.memory_space<vmem>>) target_semaphore(%30 : memref<!tpu.dma_semaphore, #tpu.memory_space<semaphore_mem>>)
    %31 = arith.index_cast %22 : i32 to index
    %32 = memref.load %arg2[%31] : memref<8xi32, #tpu.memory_space<smem>>
    %c0_i32_18 = arith.constant 0 : i32
    %c1_i32_19 = arith.constant 1 : i32
    %c0_i32_20 = arith.constant 0 : i32
    %c0_i32_21 = arith.constant 0 : i32
    %33 = tpu.memref_slice %arg3[%32, %c0_i32_21] : memref<64x256xf32, #tpu.memory_space<any>> -> memref<1x256xf32, #tpu.memory_space<any>>
    %34 = tpu.memref_squeeze %33 : memref<1x256xf32, #tpu.memory_space<any>> -> memref<256xf32, #tpu.memory_space<any>>
    %c0_i32_22 = arith.constant 0 : i32
    %35 = tpu.memref_slice %arg8[%c0_i32_18, %c1_i32_11, %c0_i32_22] : memref<2x8x256xf32, #tpu.memory_space<vmem>> -> memref<1x1x256xf32, #tpu.memory_space<vmem>>
    %36 = tpu.memref_squeeze %35 : memref<1x1x256xf32, #tpu.memory_space<vmem>> -> memref<256xf32, #tpu.memory_space<vmem>>
    %37 = tpu.memref_slice %arg9[%c1_i32_19, %c0_i32_20] : memref<2x2x!tpu.dma_semaphore, #tpu.memory_space<semaphore_mem>> -> memref<1x1x!tpu.dma_semaphore, #tpu.memory_space<semaphore_mem>>
    %38 = tpu.memref_squeeze %37 : memref<1x1x!tpu.dma_semaphore, #tpu.memory_space<semaphore_mem>> -> memref<!tpu.dma_semaphore, #tpu.memory_space<semaphore_mem>>
    tpu.enqueue_dma source(%34 : memref<256xf32, #tpu.memory_space<any>>) target(%36 : memref<256xf32, #tpu.memory_space<vmem>>) target_semaphore(%38 : memref<!tpu.dma_semaphore, #tpu.memory_space<semaphore_mem>>)
    %c2_i32 = arith.constant 2 : i32
    %39 = arith.addi %2, %c2_i32 : i32
    %c7_i32_23 = arith.constant 7 : i32
    %40 = arith.minsi %39, %c7_i32_23 : i32
    %41 = arith.index_cast %40 : i32 to index
    %42 = memref.load %arg1[%41] : memref<8xi32, #tpu.memory_space<smem>>
    %c0_i32_24 = arith.constant 0 : i32
    %c0_i32_25 = arith.constant 0 : i32
    %c0_i32_26 = arith.constant 0 : i32
    %c0_i32_27 = arith.constant 0 : i32
    %43 = tpu.memref_slice %arg3[%42, %c0_i32_27] : memref<64x256xf32, #tpu.memory_space<any>> -> memref<1x256xf32, #tpu.memory_space<any>>
    %44 = tpu.memref_squeeze %43 : memref<1x256xf32, #tpu.memory_space<any>> -> memref<256xf32, #tpu.memory_space<any>>
    %c0_i32_28 = arith.constant 0 : i32
    %45 = tpu.memref_slice %arg7[%c0_i32_24, %c2_i32, %c0_i32_28] : memref<2x8x256xf32, #tpu.memory_space<vmem>> -> memref<1x1x256xf32, #tpu.memory_space<vmem>>
    %46 = tpu.memref_squeeze %45 : memref<1x1x256xf32, #tpu.memory_space<vmem>> -> memref<256xf32, #tpu.memory_space<vmem>>
    %47 = tpu.memref_slice %arg9[%c0_i32_25, %c0_i32_26] : memref<2x2x!tpu.dma_semaphore, #tpu.memory_space<semaphore_mem>> -> memref<1x1x!tpu.dma_semaphore, #tpu.memory_space<semaphore_mem>>
    %48 = tpu.memref_squeeze %47 : memref<1x1x!tpu.dma_semaphore, #tpu.memory_space<semaphore_mem>> -> memref<!tpu.dma_semaphore, #tpu.memory_space<semaphore_mem>>
    tpu.enqueue_dma source(%44 : memref<256xf32, #tpu.memory_space<any>>) target(%46 : memref<256xf32, #tpu.memory_space<vmem>>) target_semaphore(%48 : memref<!tpu.dma_semaphore, #tpu.memory_space<semaphore_mem>>)
    %49 = arith.index_cast %40 : i32 to index
    %50 = memref.load %arg2[%49] : memref<8xi32, #tpu.memory_space<smem>>
    %c0_i32_29 = arith.constant 0 : i32
    %c1_i32_30 = arith.constant 1 : i32
    %c0_i32_31 = arith.constant 0 : i32
    %c0_i32_32 = arith.constant 0 : i32
    %51 = tpu.memref_slice %arg3[%50, %c0_i32_32] : memref<64x256xf32, #tpu.memory_space<any>> -> memref<1x256xf32, #tpu.memory_space<any>>
    %52 = tpu.memref_squeeze %51 : memref<1x256xf32, #tpu.memory_space<any>> -> memref<256xf32, #tpu.memory_space<any>>
    %c0_i32_33 = arith.constant 0 : i32
    %53 = tpu.memref_slice %arg8[%c0_i32_29, %c2_i32, %c0_i32_33] : memref<2x8x256xf32, #tpu.memory_space<vmem>> -> memref<1x1x256xf32, #tpu.memory_space<vmem>>
    %54 = tpu.memref_squeeze %53 : memref<1x1x256xf32, #tpu.memory_space<vmem>> -> memref<256xf32, #tpu.memory_space<vmem>>
    %55 = tpu.memref_slice %arg9[%c1_i32_30, %c0_i32_31] : memref<2x2x!tpu.dma_semaphore, #tpu.memory_space<semaphore_mem>> -> memref<1x1x!tpu.dma_semaphore, #tpu.memory_space<semaphore_mem>>
    %56 = tpu.memref_squeeze %55 : memref<1x1x!tpu.dma_semaphore, #tpu.memory_space<semaphore_mem>> -> memref<!tpu.dma_semaphore, #tpu.memory_space<semaphore_mem>>
    tpu.enqueue_dma source(%52 : memref<256xf32, #tpu.memory_space<any>>) target(%54 : memref<256xf32, #tpu.memory_space<vmem>>) target_semaphore(%56 : memref<!tpu.dma_semaphore, #tpu.memory_space<semaphore_mem>>)
    %c3_i32 = arith.constant 3 : i32
    %57 = arith.addi %2, %c3_i32 : i32
    %c7_i32_34 = arith.constant 7 : i32
    %58 = arith.minsi %57, %c7_i32_34 : i32
    %59 = arith.index_cast %58 : i32 to index
    %60 = memref.load %arg1[%59] : memref<8xi32, #tpu.memory_space<smem>>
    %c0_i32_35 = arith.constant 0 : i32
    %c0_i32_36 = arith.constant 0 : i32
    %c0_i32_37 = arith.constant 0 : i32
    %c0_i32_38 = arith.constant 0 : i32
    %61 = tpu.memref_slice %arg3[%60, %c0_i32_38] : memref<64x256xf32, #tpu.memory_space<any>> -> memref<1x256xf32, #tpu.memory_space<any>>
    %62 = tpu.memref_squeeze %61 : memref<1x256xf32, #tpu.memory_space<any>> -> memref<256xf32, #tpu.memory_space<any>>
    %c0_i32_39 = arith.constant 0 : i32
    %63 = tpu.memref_slice %arg7[%c0_i32_35, %c3_i32, %c0_i32_39] : memref<2x8x256xf32, #tpu.memory_space<vmem>> -> memref<1x1x256xf32, #tpu.memory_space<vmem>>
    %64 = tpu.memref_squeeze %63 : memref<1x1x256xf32, #tpu.memory_space<vmem>> -> memref<256xf32, #tpu.memory_space<vmem>>
    %65 = tpu.memref_slice %arg9[%c0_i32_36, %c0_i32_37] : memref<2x2x!tpu.dma_semaphore, #tpu.memory_space<semaphore_mem>> -> memref<1x1x!tpu.dma_semaphore, #tpu.memory_space<semaphore_mem>>
    %66 = tpu.memref_squeeze %65 : memref<1x1x!tpu.dma_semaphore, #tpu.memory_space<semaphore_mem>> -> memref<!tpu.dma_semaphore, #tpu.memory_space<semaphore_mem>>
    tpu.enqueue_dma source(%62 : memref<256xf32, #tpu.memory_space<any>>) target(%64 : memref<256xf32, #tpu.memory_space<vmem>>) target_semaphore(%66 : memref<!tpu.dma_semaphore, #tpu.memory_space<semaphore_mem>>)
    %67 = arith.index_cast %58 : i32 to index
    %68 = memref.load %arg2[%67] : memref<8xi32, #tpu.memory_space<smem>>
    %c0_i32_40 = arith.constant 0 : i32
    %c1_i32_41 = arith.constant 1 : i32
    %c0_i32_42 = arith.constant 0 : i32
    %c0_i32_43 = arith.constant 0 : i32
    %69 = tpu.memref_slice %arg3[%68, %c0_i32_43] : memref<64x256xf32, #tpu.memory_space<any>> -> memref<1x256xf32, #tpu.memory_space<any>>
    %70 = tpu.memref_squeeze %69 : memref<1x256xf32, #tpu.memory_space<any>> -> memref<256xf32, #tpu.memory_space<any>>
    %c0_i32_44 = arith.constant 0 : i32
    %71 = tpu.memref_slice %arg8[%c0_i32_40, %c3_i32, %c0_i32_44] : memref<2x8x256xf32, #tpu.memory_space<vmem>> -> memref<1x1x256xf32, #tpu.memory_space<vmem>>
    %72 = tpu.memref_squeeze %71 : memref<1x1x256xf32, #tpu.memory_space<vmem>> -> memref<256xf32, #tpu.memory_space<vmem>>
    %73 = tpu.memref_slice %arg9[%c1_i32_41, %c0_i32_42] : memref<2x2x!tpu.dma_semaphore, #tpu.memory_space<semaphore_mem>> -> memref<1x1x!tpu.dma_semaphore, #tpu.memory_space<semaphore_mem>>
    %74 = tpu.memref_squeeze %73 : memref<1x1x!tpu.dma_semaphore, #tpu.memory_space<semaphore_mem>> -> memref<!tpu.dma_semaphore, #tpu.memory_space<semaphore_mem>>
    tpu.enqueue_dma source(%70 : memref<256xf32, #tpu.memory_space<any>>) target(%72 : memref<256xf32, #tpu.memory_space<vmem>>) target_semaphore(%74 : memref<!tpu.dma_semaphore, #tpu.memory_space<semaphore_mem>>)
    %c4_i32 = arith.constant 4 : i32
    %75 = arith.addi %2, %c4_i32 : i32
    %c7_i32_45 = arith.constant 7 : i32
    %76 = arith.minsi %75, %c7_i32_45 : i32
    %77 = arith.index_cast %76 : i32 to index
    %78 = memref.load %arg1[%77] : memref<8xi32, #tpu.memory_space<smem>>
    %c0_i32_46 = arith.constant 0 : i32
    %c0_i32_47 = arith.constant 0 : i32
    %c0_i32_48 = arith.constant 0 : i32
    %c0_i32_49 = arith.constant 0 : i32
    %79 = tpu.memref_slice %arg3[%78, %c0_i32_49] : memref<64x256xf32, #tpu.memory_space<any>> -> memref<1x256xf32, #tpu.memory_space<any>>
    %80 = tpu.memref_squeeze %79 : memref<1x256xf32, #tpu.memory_space<any>> -> memref<256xf32, #tpu.memory_space<any>>
    %c0_i32_50 = arith.constant 0 : i32
    %81 = tpu.memref_slice %arg7[%c0_i32_46, %c4_i32, %c0_i32_50] : memref<2x8x256xf32, #tpu.memory_space<vmem>> -> memref<1x1x256xf32, #tpu.memory_space<vmem>>
    %82 = tpu.memref_squeeze %81 : memref<1x1x256xf32, #tpu.memory_space<vmem>> -> memref<256xf32, #tpu.memory_space<vmem>>
    %83 = tpu.memref_slice %arg9[%c0_i32_47, %c0_i32_48] : memref<2x2x!tpu.dma_semaphore, #tpu.memory_space<semaphore_mem>> -> memref<1x1x!tpu.dma_semaphore, #tpu.memory_space<semaphore_mem>>
    %84 = tpu.memref_squeeze %83 : memref<1x1x!tpu.dma_semaphore, #tpu.memory_space<semaphore_mem>> -> memref<!tpu.dma_semaphore, #tpu.memory_space<semaphore_mem>>
    tpu.enqueue_dma source(%80 : memref<256xf32, #tpu.memory_space<any>>) target(%82 : memref<256xf32, #tpu.memory_space<vmem>>) target_semaphore(%84 : memref<!tpu.dma_semaphore, #tpu.memory_space<semaphore_mem>>)
    %85 = arith.index_cast %76 : i32 to index
    %86 = memref.load %arg2[%85] : memref<8xi32, #tpu.memory_space<smem>>
    %c0_i32_51 = arith.constant 0 : i32
    %c1_i32_52 = arith.constant 1 : i32
    %c0_i32_53 = arith.constant 0 : i32
    %c0_i32_54 = arith.constant 0 : i32
    %87 = tpu.memref_slice %arg3[%86, %c0_i32_54] : memref<64x256xf32, #tpu.memory_space<any>> -> memref<1x256xf32, #tpu.memory_space<any>>
    %88 = tpu.memref_squeeze %87 : memref<1x256xf32, #tpu.memory_space<any>> -> memref<256xf32, #tpu.memory_space<any>>
    %c0_i32_55 = arith.constant 0 : i32
    %89 = tpu.memref_slice %arg8[%c0_i32_51, %c4_i32, %c0_i32_55] : memref<2x8x256xf32, #tpu.memory_space<vmem>> -> memref<1x1x256xf32, #tpu.memory_space<vmem>>
    %90 = tpu.memref_squeeze %89 : memref<1x1x256xf32, #tpu.memory_space<vmem>> -> memref<256xf32, #tpu.memory_space<vmem>>
    %91 = tpu.memref_slice %arg9[%c1_i32_52, %c0_i32_53] : memref<2x2x!tpu.dma_semaphore, #tpu.memory_space<semaphore_mem>> -> memref<1x1x!tpu.dma_semaphore, #tpu.memory_space<semaphore_mem>>
    %92 = tpu.memref_squeeze %91 : memref<1x1x!tpu.dma_semaphore, #tpu.memory_space<semaphore_mem>> -> memref<!tpu.dma_semaphore, #tpu.memory_space<semaphore_mem>>
    tpu.enqueue_dma source(%88 : memref<256xf32, #tpu.memory_space<any>>) target(%90 : memref<256xf32, #tpu.memory_space<vmem>>) target_semaphore(%92 : memref<!tpu.dma_semaphore, #tpu.memory_space<semaphore_mem>>)
    %c5_i32 = arith.constant 5 : i32
    %93 = arith.addi %2, %c5_i32 : i32
    %c7_i32_56 = arith.constant 7 : i32
    %94 = arith.minsi %93, %c7_i32_56 : i32
    %95 = arith.index_cast %94 : i32 to index
    %96 = memref.load %arg1[%95] : memref<8xi32, #tpu.memory_space<smem>>
    %c0_i32_57 = arith.constant 0 : i32
    %c0_i32_58 = arith.constant 0 : i32
    %c0_i32_59 = arith.constant 0 : i32
    %c0_i32_60 = arith.constant 0 : i32
    %97 = tpu.memref_slice %arg3[%96, %c0_i32_60] : memref<64x256xf32, #tpu.memory_space<any>> -> memref<1x256xf32, #tpu.memory_space<any>>
    %98 = tpu.memref_squeeze %97 : memref<1x256xf32, #tpu.memory_space<any>> -> memref<256xf32, #tpu.memory_space<any>>
    %c0_i32_61 = arith.constant 0 : i32
    %99 = tpu.memref_slice %arg7[%c0_i32_57, %c5_i32, %c0_i32_61] : memref<2x8x256xf32, #tpu.memory_space<vmem>> -> memref<1x1x256xf32, #tpu.memory_space<vmem>>
    %100 = tpu.memref_squeeze %99 : memref<1x1x256xf32, #tpu.memory_space<vmem>> -> memref<256xf32, #tpu.memory_space<vmem>>
    %101 = tpu.memref_slice %arg9[%c0_i32_58, %c0_i32_59] : memref<2x2x!tpu.dma_semaphore, #tpu.memory_space<semaphore_mem>> -> memref<1x1x!tpu.dma_semaphore, #tpu.memory_space<semaphore_mem>>
    %102 = tpu.memref_squeeze %101 : memref<1x1x!tpu.dma_semaphore, #tpu.memory_space<semaphore_mem>> -> memref<!tpu.dma_semaphore, #tpu.memory_space<semaphore_mem>>
    tpu.enqueue_dma source(%98 : memref<256xf32, #tpu.memory_space<any>>) target(%100 : memref<256xf32, #tpu.memory_space<vmem>>) target_semaphore(%102 : memref<!tpu.dma_semaphore, #tpu.memory_space<semaphore_mem>>)
    %103 = arith.index_cast %94 : i32 to index
    %104 = memref.load %arg2[%103] : memref<8xi32, #tpu.memory_space<smem>>
    %c0_i32_62 = arith.constant 0 : i32
    %c1_i32_63 = arith.constant 1 : i32
    %c0_i32_64 = arith.constant 0 : i32
    %c0_i32_65 = arith.constant 0 : i32
    %105 = tpu.memref_slice %arg3[%104, %c0_i32_65] : memref<64x256xf32, #tpu.memory_space<any>> -> memref<1x256xf32, #tpu.memory_space<any>>
    %106 = tpu.memref_squeeze %105 : memref<1x256xf32, #tpu.memory_space<any>> -> memref<256xf32, #tpu.memory_space<any>>
    %c0_i32_66 = arith.constant 0 : i32
    %107 = tpu.memref_slice %arg8[%c0_i32_62, %c5_i32, %c0_i32_66] : memref<2x8x256xf32, #tpu.memory_space<vmem>> -> memref<1x1x256xf32, #tpu.memory_space<vmem>>
    %108 = tpu.memref_squeeze %107 : memref<1x1x256xf32, #tpu.memory_space<vmem>> -> memref<256xf32, #tpu.memory_space<vmem>>
    %109 = tpu.memref_slice %arg9[%c1_i32_63, %c0_i32_64] : memref<2x2x!tpu.dma_semaphore, #tpu.memory_space<semaphore_mem>> -> memref<1x1x!tpu.dma_semaphore, #tpu.memory_space<semaphore_mem>>
    %110 = tpu.memref_squeeze %109 : memref<1x1x!tpu.dma_semaphore, #tpu.memory_space<semaphore_mem>> -> memref<!tpu.dma_semaphore, #tpu.memory_space<semaphore_mem>>
    tpu.enqueue_dma source(%106 : memref<256xf32, #tpu.memory_space<any>>) target(%108 : memref<256xf32, #tpu.memory_space<vmem>>) target_semaphore(%110 : memref<!tpu.dma_semaphore, #tpu.memory_space<semaphore_mem>>)
    %c6_i32 = arith.constant 6 : i32
    %111 = arith.addi %2, %c6_i32 : i32
    %c7_i32_67 = arith.constant 7 : i32
    %112 = arith.minsi %111, %c7_i32_67 : i32
    %113 = arith.index_cast %112 : i32 to index
    %114 = memref.load %arg1[%113] : memref<8xi32, #tpu.memory_space<smem>>
    %c0_i32_68 = arith.constant 0 : i32
    %c0_i32_69 = arith.constant 0 : i32
    %c0_i32_70 = arith.constant 0 : i32
    %c0_i32_71 = arith.constant 0 : i32
    %115 = tpu.memref_slice %arg3[%114, %c0_i32_71] : memref<64x256xf32, #tpu.memory_space<any>> -> memref<1x256xf32, #tpu.memory_space<any>>
    %116 = tpu.memref_squeeze %115 : memref<1x256xf32, #tpu.memory_space<any>> -> memref<256xf32, #tpu.memory_space<any>>
    %c0_i32_72 = arith.constant 0 : i32
    %117 = tpu.memref_slice %arg7[%c0_i32_68, %c6_i32, %c0_i32_72] : memref<2x8x256xf32, #tpu.memory_space<vmem>> -> memref<1x1x256xf32, #tpu.memory_space<vmem>>
    %118 = tpu.memref_squeeze %117 : memref<1x1x256xf32, #tpu.memory_space<vmem>> -> memref<256xf32, #tpu.memory_space<vmem>>
    %119 = tpu.memref_slice %arg9[%c0_i32_69, %c0_i32_70] : memref<2x2x!tpu.dma_semaphore, #tpu.memory_space<semaphore_mem>> -> memref<1x1x!tpu.dma_semaphore, #tpu.memory_space<semaphore_mem>>
    %120 = tpu.memref_squeeze %119 : memref<1x1x!tpu.dma_semaphore, #tpu.memory_space<semaphore_mem>> -> memref<!tpu.dma_semaphore, #tpu.memory_space<semaphore_mem>>
    tpu.enqueue_dma source(%116 : memref<256xf32, #tpu.memory_space<any>>) target(%118 : memref<256xf32, #tpu.memory_space<vmem>>) target_semaphore(%120 : memref<!tpu.dma_semaphore, #tpu.memory_space<semaphore_mem>>)
    %121 = arith.index_cast %112 : i32 to index
    %122 = memref.load %arg2[%121] : memref<8xi32, #tpu.memory_space<smem>>
    %c0_i32_73 = arith.constant 0 : i32
    %c1_i32_74 = arith.constant 1 : i32
    %c0_i32_75 = arith.constant 0 : i32
    %c0_i32_76 = arith.constant 0 : i32
    %123 = tpu.memref_slice %arg3[%122, %c0_i32_76] : memref<64x256xf32, #tpu.memory_space<any>> -> memref<1x256xf32, #tpu.memory_space<any>>
    %124 = tpu.memref_squeeze %123 : memref<1x256xf32, #tpu.memory_space<any>> -> memref<256xf32, #tpu.memory_space<any>>
    %c0_i32_77 = arith.constant 0 : i32
    %125 = tpu.memref_slice %arg8[%c0_i32_73, %c6_i32, %c0_i32_77] : memref<2x8x256xf32, #tpu.memory_space<vmem>> -> memref<1x1x256xf32, #tpu.memory_space<vmem>>
    %126 = tpu.memref_squeeze %125 : memref<1x1x256xf32, #tpu.memory_space<vmem>> -> memref<256xf32, #tpu.memory_space<vmem>>
    %127 = tpu.memref_slice %arg9[%c1_i32_74, %c0_i32_75] : memref<2x2x!tpu.dma_semaphore, #tpu.memory_space<semaphore_mem>> -> memref<1x1x!tpu.dma_semaphore, #tpu.memory_space<semaphore_mem>>
    %128 = tpu.memref_squeeze %127 : memref<1x1x!tpu.dma_semaphore, #tpu.memory_space<semaphore_mem>> -> memref<!tpu.dma_semaphore, #tpu.memory_space<semaphore_mem>>
    tpu.enqueue_dma source(%124 : memref<256xf32, #tpu.memory_space<any>>) target(%126 : memref<256xf32, #tpu.memory_space<vmem>>) target_semaphore(%128 : memref<!tpu.dma_semaphore, #tpu.memory_space<semaphore_mem>>)
    %c7_i32_78 = arith.constant 7 : i32
    %129 = arith.addi %2, %c7_i32_78 : i32
    %c7_i32_79 = arith.constant 7 : i32
    %130 = arith.minsi %129, %c7_i32_79 : i32
    %131 = arith.index_cast %130 : i32 to index
    %132 = memref.load %arg1[%131] : memref<8xi32, #tpu.memory_space<smem>>
    %c0_i32_80 = arith.constant 0 : i32
    %c0_i32_81 = arith.constant 0 : i32
    %c0_i32_82 = arith.constant 0 : i32
    %c0_i32_83 = arith.constant 0 : i32
    %133 = tpu.memref_slice %arg3[%132, %c0_i32_83] : memref<64x256xf32, #tpu.memory_space<any>> -> memref<1x256xf32, #tpu.memory_space<any>>
    %134 = tpu.memref_squeeze %133 : memref<1x256xf32, #tpu.memory_space<any>> -> memref<256xf32, #tpu.memory_space<any>>
    %c0_i32_84 = arith.constant 0 : i32
    %135 = tpu.memref_slice %arg7[%c0_i32_80, %c7_i32_78, %c0_i32_84] : memref<2x8x256xf32, #tpu.memory_space<vmem>> -> memref<1x1x256xf32, #tpu.memory_space<vmem>>
    %136 = tpu.memref_squeeze %135 : memref<1x1x256xf32, #tpu.memory_space<vmem>> -> memref<256xf32, #tpu.memory_space<vmem>>
    %137 = tpu.memref_slice %arg9[%c0_i32_81, %c0_i32_82] : memref<2x2x!tpu.dma_semaphore, #tpu.memory_space<semaphore_mem>> -> memref<1x1x!tpu.dma_semaphore, #tpu.memory_space<semaphore_mem>>
    %138 = tpu.memref_squeeze %137 : memref<1x1x!tpu.dma_semaphore, #tpu.memory_space<semaphore_mem>> -> memref<!tpu.dma_semaphore, #tpu.memory_space<semaphore_mem>>
    tpu.enqueue_dma source(%134 : memref<256xf32, #tpu.memory_space<any>>) target(%136 : memref<256xf32, #tpu.memory_space<vmem>>) target_semaphore(%138 : memref<!tpu.dma_semaphore, #tpu.memory_space<semaphore_mem>>)
    %139 = arith.index_cast %130 : i32 to index
    %140 = memref.load %arg2[%139] : memref<8xi32, #tpu.memory_space<smem>>
    %c0_i32_85 = arith.constant 0 : i32
    %c1_i32_86 = arith.constant 1 : i32
    %c0_i32_87 = arith.constant 0 : i32
    %c0_i32_88 = arith.constant 0 : i32
    %141 = tpu.memref_slice %arg3[%140, %c0_i32_88] : memref<64x256xf32, #tpu.memory_space<any>> -> memref<1x256xf32, #tpu.memory_space<any>>
    %142 = tpu.memref_squeeze %141 : memref<1x256xf32, #tpu.memory_space<any>> -> memref<256xf32, #tpu.memory_space<any>>
    %c0_i32_89 = arith.constant 0 : i32
    %143 = tpu.memref_slice %arg8[%c0_i32_85, %c7_i32_78, %c0_i32_89] : memref<2x8x256xf32, #tpu.memory_space<vmem>> -> memref<1x1x256xf32, #tpu.memory_space<vmem>>
    %144 = tpu.memref_squeeze %143 : memref<1x1x256xf32, #tpu.memory_space<vmem>> -> memref<256xf32, #tpu.memory_space<vmem>>
    %145 = tpu.memref_slice %arg9[%c1_i32_86, %c0_i32_87] : memref<2x2x!tpu.dma_semaphore, #tpu.memory_space<semaphore_mem>> -> memref<1x1x!tpu.dma_semaphore, #tpu.memory_space<semaphore_mem>>
    %146 = tpu.memref_squeeze %145 : memref<1x1x!tpu.dma_semaphore, #tpu.memory_space<semaphore_mem>> -> memref<!tpu.dma_semaphore, #tpu.memory_space<semaphore_mem>>
    tpu.enqueue_dma source(%142 : memref<256xf32, #tpu.memory_space<any>>) target(%144 : memref<256xf32, #tpu.memory_space<vmem>>) target_semaphore(%146 : memref<!tpu.dma_semaphore, #tpu.memory_space<semaphore_mem>>)
    %c8_i32_90 = arith.constant 8 : i32
    %c0_i32_91 = arith.constant 0 : i32
    %c0_i32_92 = arith.constant 0 : i32
    %c0_i32_93 = arith.constant 0 : i32
    %c0_i32_94 = arith.constant 0 : i32
    %c0_i32_95 = arith.constant 0 : i32
    %147 = tpu.memref_slice %arg3[%c0_i32_94, %c0_i32_95] : memref<64x256xf32, #tpu.memory_space<any>> -> memref<8x256xf32, #tpu.memory_space<any>>
    %c0_i32_96 = arith.constant 0 : i32
    %c0_i32_97 = arith.constant 0 : i32
    %148 = tpu.memref_slice %arg7[%c0_i32_91, %c0_i32_96, %c0_i32_97] : memref<2x8x256xf32, #tpu.memory_space<vmem>> -> memref<1x8x256xf32, #tpu.memory_space<vmem>>
    %149 = tpu.memref_squeeze %148 : memref<1x8x256xf32, #tpu.memory_space<vmem>> -> memref<8x256xf32, #tpu.memory_space<vmem>>
    %150 = tpu.memref_slice %arg9[%c0_i32_92, %c0_i32_93] : memref<2x2x!tpu.dma_semaphore, #tpu.memory_space<semaphore_mem>> -> memref<1x1x!tpu.dma_semaphore, #tpu.memory_space<semaphore_mem>>
    %151 = tpu.memref_squeeze %150 : memref<1x1x!tpu.dma_semaphore, #tpu.memory_space<semaphore_mem>> -> memref<!tpu.dma_semaphore, #tpu.memory_space<semaphore_mem>>
    tpu.wait_dma2 semaphore(%151 : memref<!tpu.dma_semaphore, #tpu.memory_space<semaphore_mem>>) src(%147 : memref<8x256xf32, #tpu.memory_space<any>>) dst(%149 : memref<8x256xf32, #tpu.memory_space<vmem>>)
    %c0_i32_98 = arith.constant 0 : i32
    %c1_i32_99 = arith.constant 1 : i32
    %c0_i32_100 = arith.constant 0 : i32
    %c0_i32_101 = arith.constant 0 : i32
    %c0_i32_102 = arith.constant 0 : i32
    %152 = tpu.memref_slice %arg3[%c0_i32_101, %c0_i32_102] : memref<64x256xf32, #tpu.memory_space<any>> -> memref<8x256xf32, #tpu.memory_space<any>>
    %c0_i32_103 = arith.constant 0 : i32
    %c0_i32_104 = arith.constant 0 : i32
    %153 = tpu.memref_slice %arg8[%c0_i32_98, %c0_i32_103, %c0_i32_104] : memref<2x8x256xf32, #tpu.memory_space<vmem>> -> memref<1x8x256xf32, #tpu.memory_space<vmem>>
    %154 = tpu.memref_squeeze %153 : memref<1x8x256xf32, #tpu.memory_space<vmem>> -> memref<8x256xf32, #tpu.memory_space<vmem>>
    %155 = tpu.memref_slice %arg9[%c1_i32_99, %c0_i32_100] : memref<2x2x!tpu.dma_semaphore, #tpu.memory_space<semaphore_mem>> -> memref<1x1x!tpu.dma_semaphore, #tpu.memory_space<semaphore_mem>>
    %156 = tpu.memref_squeeze %155 : memref<1x1x!tpu.dma_semaphore, #tpu.memory_space<semaphore_mem>> -> memref<!tpu.dma_semaphore, #tpu.memory_space<semaphore_mem>>
    tpu.wait_dma2 semaphore(%156 : memref<!tpu.dma_semaphore, #tpu.memory_space<semaphore_mem>>) src(%152 : memref<8x256xf32, #tpu.memory_space<any>>) dst(%154 : memref<8x256xf32, #tpu.memory_space<vmem>>)
    %c0_105 = arith.constant 0 : index
    %c0_106 = arith.constant 0 : index
    %c0_107 = arith.constant 0 : index
    %157 = vector.load %arg7[%c0_105, %c0_106, %c0_107] : memref<2x8x256xf32, #tpu.memory_space<vmem>>, vector<1x8x256xf32>
    %158 = vector.shape_cast %157 : vector<1x8x256xf32> to vector<8x256xf32>
    %c0_108 = arith.constant 0 : index
    %c0_109 = arith.constant 0 : index
    %c0_110 = arith.constant 0 : index
    %159 = vector.load %arg8[%c0_108, %c0_109, %c0_110] : memref<2x8x256xf32, #tpu.memory_space<vmem>>, vector<1x8x256xf32>
    %160 = vector.shape_cast %159 : vector<1x8x256xf32> to vector<8x256xf32>
    %c0_111 = arith.constant 0 : index
    %c0_112 = arith.constant 0 : index
    %161 = vector.load %arg5[%c0_111, %c0_112] : memref<8x1xi32, #tpu.memory_space<vmem>>, vector<8x1xi32>
    %162 = tpu.iota {dimensions = array<i32: 1>} : vector<8x8xi32>
    %163 = vector.broadcast %161 : vector<8x1xi32> to vector<8x8xi32>
    %164 = arith.cmpi eq, %163, %162 : vector<8x8xi32>
    %165 = arith.extui %164 : vector<8x8xi1> to vector<8x8xi32>
    %166 = arith.sitofp %165 : vector<8x8xi32> to vector<8x8xf32>
    %cst = arith.constant dense<0.000000e+00> : vector<8x256xf32>
    %167 = tpu.matmul %166, %1, %cst {dimension_numbers = #tpu.dot_dimension_numbers<[1], [0], [0], [1], [0, 0, 1, 1], [], []>, precision = #tpu.contract_precision<fp32>} : vector<8x8xf32>, vector<8x256xf32>, vector<8x256xf32> -> vector<8x256xf32>
    %168 = vector.extract_strided_slice %158 {offsets = [0, 0], sizes = [8, 128], strides = [1, 1]} : vector<8x256xf32> to vector<8x128xf32>
    %169 = vector.extract_strided_slice %158 {offsets = [0, 128], sizes = [8, 128], strides = [1, 1]} : vector<8x256xf32> to vector<8x128xf32>
    %170 = vector.extract_strided_slice %160 {offsets = [0, 0], sizes = [8, 128], strides = [1, 1]} : vector<8x256xf32> to vector<8x128xf32>
    %171 = vector.extract_strided_slice %160 {offsets = [0, 128], sizes = [8, 128], strides = [1, 1]} : vector<8x256xf32> to vector<8x128xf32>
    %172 = vector.extract_strided_slice %167 {offsets = [0, 0], sizes = [8, 128], strides = [1, 1]} : vector<8x256xf32> to vector<8x128xf32>
    %173 = vector.extract_strided_slice %167 {offsets = [0, 128], sizes = [8, 128], strides = [1, 1]} : vector<8x256xf32> to vector<8x128xf32>
    %174 = arith.mulf %172, %168 : vector<8x128xf32>
    %175 = arith.mulf %173, %169 : vector<8x128xf32>
    %176 = arith.subf %174, %175 : vector<8x128xf32>
    %177 = arith.subf %176, %170 : vector<8x128xf32>
    %178 = arith.mulf %172, %169 : vector<8x128xf32>
    %179 = arith.mulf %173, %168 : vector<8x128xf32>
    %180 = arith.addf %178, %179 : vector<8x128xf32>
    %181 = arith.subf %180, %171 : vector<8x128xf32>
    %182 = arith.mulf %177, %177 : vector<8x128xf32>
    %183 = arith.mulf %181, %181 : vector<8x128xf32>
    %184 = arith.addf %182, %183 : vector<8x128xf32>
    %cst_113 = arith.constant dense<0.000000e+00> : vector<8xf32>
    %185 = vector.multi_reduction <add>, %184, %cst_113 [1] : vector<8x128xf32> to vector<8xf32>
    %186 = math.sqrt %185 : vector<8xf32>
    %cst_114 = arith.constant 0.000000e+00 : f32
    %187 = vector.broadcast %cst_114 : f32 to vector<8xf32>
    %188 = arith.subf %187, %186 : vector<8xf32>
    %189 = vector.shape_cast %188 : vector<8xf32> to vector<1x8xf32>
    %c0_115 = arith.constant 0 : index
    %c0_116 = arith.constant 0 : index
    %190 = vector.load %arg6[%c0_115, %c0_116] : memref<1x8xf32, #tpu.memory_space<vmem>>, vector<1x8xf32>
    tpu.vector_store %arg6[%c0_115, %c0_116], %189 {strides = array<i32>} : memref<1x8xf32, #tpu.memory_space<vmem>>, vector<1x8xf32>,
    return
  }
  func.func @transform_1(%arg0: i32, %arg1: memref<8xi32, #tpu.memory_space<smem>>, %arg2: memref<8xi32, #tpu.memory_space<smem>>) -> (i32, i32) {
    %c0_i32 = arith.constant 0 : i32
    %c0_i32_0 = arith.constant 0 : i32
    %c0_i32_1 = arith.constant 0 : i32
    return %c0_i32, %c0_i32_0 : i32, i32
  }
  func.func @transform_2(%arg0: i32, %arg1: memref<8xi32, #tpu.memory_space<smem>>, %arg2: memref<8xi32, #tpu.memory_space<smem>>) -> (i32, i32) {
    %c0_i32 = arith.constant 0 : i32
    %c0_i32_0 = arith.constant 0 : i32
    return %arg0, %c0_i32 : i32, i32
  }
  func.func @transform_3(%arg0: i32, %arg1: memref<8xi32, #tpu.memory_space<smem>>, %arg2: memref<8xi32, #tpu.memory_space<smem>>) -> (i32, i32) {
    %c0_i32 = arith.constant 0 : i32
    %c0_i32_0 = arith.constant 0 : i32
    return %c0_i32, %arg0 : i32, i32
  }
}

</mosaic_0001>

<bundles_post_ra>
// kernel: tpu_custom_call.1
= control target key start
LH: loop header
LB: loop body
LE: loop exit
PB: predicated region body
PF: predicated region fallthrough
CT: control target
= control target key end

     0   :  { %s1279_s24 = smov [#allocation6]   ;;  %s1280_s25 = smov [#allocation7]   ;;  %s1618_s0 = inlined_call_operand.vmem [shape: s32[8], index: 0, kind: input, shape index: {}]   ;;  %s1619_s2 = inlined_call_operand.hbm [shape: f32[64,256], index: 2, kind: input, shape index: {}]   ;;  %s1620_s3 = inlined_call_operand.hbm [shape: f32[8,256], index: 3, kind: input, shape index: {}]   ;;  %s1621_s4 = inlined_call_operand.vmem [shape: s32[8,1], index: 4, kind: input, shape index: {}]   ;;  %s1622_s5 = inlined_call_operand.hbm [shape: f32[1,8], index: 5, kind: output, shape index: {}]   ;;  %s1623_s1 = inlined_call_operand.vmem [shape: s32[8], index: 1, kind: input, shape index: {}]  }
   0x1   :  { %s11_s20 = sshll.u32 %s1618_s0, 4  ;;  %s16_s23 = sshll.u32 %s1623_s1, 4  ;;  %s12_s20 = int_to_ptr.vmem [resolvable:$true] %s11_s20  ;;  %s17_s23 = int_to_ptr.vmem [resolvable:$true] %s16_s23 }
   0x2   :  { %14 = dma.vmem_to_smem %s12_s20, 16, %s1279_s24, [#allocation5] }
   0x3   :  { %19 = dma.vmem_to_smem %s17_s23, 16, %s1280_s25, [#allocation5] }
   0x4   :  { %1269 = dma.done.wait [#allocation5], 32 }
   0x5   :  { %1270 = vsyncadd [#allocation5], 4294967264 }
   0x6   :  { %22 = sfence }
   0x7   :  { %23 = vsyncpa [#allocation9], 0 }
   0x8   :  { %24 = vsyncpa [#allocation10], 0  ;;  %s30_s28 = sshll.u32 %s1620_s3, 4  ;;  %s1281_s0 = smov [#allocation8]   ;;  %s31_s28 = int_to_ptr.hbm [resolvable:$true] %s30_s28 }
   0x9   :  { %s32_s29 = sshll.u32 %s1281_s0, 4  ;;  %s33_s29 = int_to_ptr.vmem [resolvable:$true] %s32_s29 }
   0xa   :  { %35 = dma.hbm_to_vmem [thread:$0]  %s31_s28, 256, %s33_s29, [#allocation9]  }
   0xb   :  { %1271 = dma.done.wait [#allocation9], 256  }
   0xc   :  { %1272 = vsyncadd [#allocation9], 4294967040  ;;  %s47_s1 = sld [smem:[#allocation6]]  ;;  %s1282_s30 = smov [#allocation2]   ;;  %v1354_v0 = vld [vmem:[#allocation8] sm:$0xff]  ;;  %v1356_v1 = vld [vmem:[#allocation8 + $0x8] sm:$0xff] }
   0xd   :  { %s1342_s6 = sshll.u32 %s1282_s30, 4  ;;  %s61_s7 = sld [smem:[#allocation7]]  ;;  %s56_s6 = int_to_ptr.vmem [resolvable:$true] %s1342_s6 }
   0xe   :  { %s1283_s8 = smov [#allocation3]   ;;  %s1347_s10 = sld [smem:[#allocation6 + $0x1]] }
   0xf   :  { %s1345_s9 = sshll.u32 %s1283_s8, 4  ;;  %s1284_s3 = smov [#allocation2 + $0x1]   ;;  %s71_s9 = int_to_ptr.vmem [resolvable:$true] %s1345_s9 }
  0x10   :  { %s1350_s11 = sshll.u32 %s1284_s3, 4  ;;  %s1352_s12 = sld [smem:[#allocation7 + $0x1]]  ;;  %s89_s11 = int_to_ptr.vmem [resolvable:$true] %s1350_s11 }
  0x11   :  { %s1365_s0 = scalar_lea.hbm %s1619_s2, 128 }
  0x12   :  { %s48_s13 = sshrl.u32 %s47_s1, 3  ;;  %s49_s14 = sand.u32 7, %s47_s1  }
  0x13   :  { %s745_s15 = sshll.u32 %s48_s13, 4  ;;  %s62_s17 = sshrl.u32 %s61_s7, 3 }
  0x14   :  { %s51_s16 = sadd.s32 %s745_s15, %s49_s14  ;;  %s63_s21 = sand.u32 7, %s61_s7  }
  0x15   :  { %s52_s20 = scalar_lea.hbm %s1619_s2, %s51_s16  ;;  %s746_s23 = sshll.u32 %s62_s17, 4 }
  0x16   :  { %s53_s22 = sshll.u32 %s52_s20, 4  ;;  %s65_s24 = sadd.s32 %s746_s23, %s63_s21  ;;  %s54_s22 = int_to_ptr.hbm [resolvable:$true] %s53_s22 }
  0x17   :  { %s861_s25 = sshra.s32 %s54_s22, 4  ;;  %s862_s25 = int_to_ptr.hbm [resolvable:$true] %s861_s25 }
  0x18   :  { %s863_s26 = scalar_lea.hbm %s862_s25, 2  ;;  %p866_p1 = scmp.lt.s32.totalorder %s862_s25, %s1619_s2 }
  0x19   :  { %p864_p0 = scmp.ne.s32.totalorder %s862_s25, %s863_s26  ;;  %p867_p2 = scmp.lt.s32.totalorder %s1365_s0, %s863_s26 }
  0x1b   :  { %p868_p3 = por %p867_p2, %p866_p1 }
  0x1d   :  { %p869_p4 = pnand %p868_p3, %p864_p0 }
  0x1f   :  { %872 = shalt.err (!%p869_p4)  }
  0x20   :  { %s1285_s30 = smov 128   ;;  %s1286_s7 = smov 1  }
  0x21   :  { %60 = dma.hbm_to_vmem [thread:$0]  %s54_s22, 32, %s56_s6, [#allocation4], %s1285_s30, %s1285_s30, %s1286_s7 }
  0x22   :  { %s66_s13 = scalar_lea.hbm %s1619_s2, %s65_s24  ;;  %s80_s14 = sshrl.u32 %s1347_s10, 3 }
  0x23   :  { %s68_s15 = sshll.u32 %s66_s13, 4  ;;  %s81_s16 = sand.u32 7, %s1347_s10   ;;  %s69_s15 = int_to_ptr.hbm [resolvable:$true] %s68_s15 }
  0x24   :  { %s748_s17 = sshll.u32 %s80_s14, 4  ;;  %s885_s18 = sshra.s32 %s69_s15, 4  ;;  %s886_s18 = int_to_ptr.hbm [resolvable:$true] %s885_s18 }
  0x25   :  { %s887_s19 = scalar_lea.hbm %s886_s18, 2  ;;  %p890_p6 = scmp.lt.s32.totalorder %s886_s18, %s1619_s2 }
  0x26   :  { %p888_p5 = scmp.ne.s32.totalorder %s886_s18, %s887_s19  ;;  %p891_p7 = scmp.lt.s32.totalorder %s1365_s0, %s887_s19 }
  0x28   :  { %p892_p8 = por %p891_p7, %p890_p6 }
  0x2a   :  { %p893_p9 = pnand %p892_p8, %p888_p5 }
  0x2c   :  { %896 = shalt.err (!%p893_p9)  }
  0x2d   :  { %75 = dma.hbm_to_vmem [thread:$0]  %s69_s15, 32, %s71_s9, [#allocation4 + $0x2], %s1285_s30, %s1285_s30, %s1286_s7 }
  0x2e   :  { %s83_s6 = sadd.s32 %s748_s17, %s81_s16  ;;  %s95_s10 = sshrl.u32 %s1352_s12, 3 }
  0x2f   :  { %s84_s24 = scalar_lea.hbm %s1619_s2, %s83_s6  ;;  %s96_s25 = sand.u32 7, %s1352_s12  }
  0x30   :  { %s86_s26 = sshll.u32 %s84_s24, 4  ;;  %s750_s27 = sshll.u32 %s95_s10, 4  ;;  %s87_s26 = int_to_ptr.hbm [resolvable:$true] %s86_s26 }
  0x31   :  { %s98_s28 = sadd.s32 %s750_s27, %s96_s25  ;;  %s909_s29 = sshra.s32 %s87_s26, 4  ;;  %s910_s29 = int_to_ptr.hbm [resolvable:$true] %s909_s29 }
  0x32   :  { %s911_s1 = scalar_lea.hbm %s910_s29, 2  ;;  %p914_p11 = scmp.lt.s32.totalorder %s910_s29, %s1619_s2 }
  0x33   :  { %p912_p10 = scmp.ne.s32.totalorder %s910_s29, %s911_s1  ;;  %p915_p12 = scmp.lt.s32.totalorder %s1365_s0, %s911_s1 }
  0x35   :  { %p916_p13 = por %p915_p12, %p914_p11 }
  0x37   :  { %p917_p0 = pnand %p916_p13, %p912_p10 }
  0x39   :  { %920 = shalt.err (!%p917_p0)  }
  0x3a   :  { %93 = dma.hbm_to_vmem [thread:$0]  %s87_s26, 32, %s89_s11, [#allocation4], %s1285_s30, %s1285_s30, %s1286_s7 }
  0x3b   :  { %s99_s13 = scalar_lea.hbm %s1619_s2, %s98_s28  ;;  %s1287_s15 = smov [#allocation3 + $0x1]  }
  0x3c   :  { %s101_s14 = sshll.u32 %s99_s13, 4  ;;  %s103_s16 = sshll.u32 %s1287_s15, 4  ;;  %s102_s14 = int_to_ptr.hbm [resolvable:$true] %s101_s14  ;;  %s104_s16 = int_to_ptr.vmem [resolvable:$true] %s103_s16 }
  0x3d   :  { %s933_s17 = sshra.s32 %s102_s14, 4  ;;  %s934_s17 = int_to_ptr.hbm [resolvable:$true] %s933_s17 }
  0x3e   :  { %s935_s18 = scalar_lea.hbm %s934_s17, 2  ;;  %p938_p2 = scmp.lt.s32.totalorder %s934_s17, %s1619_s2 }
  0x3f   :  { %p936_p1 = scmp.ne.s32.totalorder %s934_s17, %s935_s18  ;;  %p939_p3 = scmp.lt.s32.totalorder %s1365_s0, %s935_s18 }
  0x41   :  { %p940_p4 = por %p939_p3, %p938_p2 }
  0x43   :  { %p941_p5 = pnand %p940_p4, %p936_p1 }
  0x45   :  { %944 = shalt.err (!%p941_p5)  }
  0x46   :  { %108 = dma.hbm_to_vmem [thread:$0]  %s102_s14, 32, %s104_s16, [#allocation4 + $0x2], %s1285_s30, %s1285_s30, %s1286_s7 }
  0x47   :  { %s751_s11 = sld [smem:[#allocation6 + $0x2]]  ;;  %s1288_s21 = smov [#allocation2 + $0x2]  }
  0x48   :  { %s1414_s6 = sshll.u32 %s1288_s21, 4  ;;  %s753_s10 = sld [smem:[#allocation7 + $0x2]]  ;;  %s122_s6 = int_to_ptr.vmem [resolvable:$true] %s1414_s6 }
  0x49   :  { %s1289_s22 = smov [#allocation3 + $0x2]   ;;  %s1419_s24 = sld [smem:[#allocation6 + $0x3]] }
  0x4a   :  { %s1417_s23 = sshll.u32 %s1289_s22, 4  ;;  %s1290_s25 = smov [#allocation2 + $0x3]   ;;  %s137_s23 = int_to_ptr.vmem [resolvable:$true] %s1417_s23 }
  0x4b   :  { %s1422_s26 = sshll.u32 %s1290_s25, 4  ;;  %s1424_s27 = sld [smem:[#allocation7 + $0x3]]  ;;  %s155_s26 = int_to_ptr.vmem [resolvable:$true] %s1422_s26 }
  0x4d   :  { %s113_s28 = sshrl.u32 %s751_s11, 3  ;;  %s114_s29 = sand.u32 7, %s751_s11  }
  0x4e   :  { %s752_s1 = sshll.u32 %s113_s28, 4  ;;  %s128_s8 = sshrl.u32 %s753_s10, 3 }
  0x4f   :  { %s116_s3 = sadd.s32 %s752_s1, %s114_s29  ;;  %s129_s9 = sand.u32 7, %s753_s10  }
  0x50   :  { %s117_s14 = scalar_lea.hbm %s1619_s2, %s116_s3  ;;  %s754_s15 = sshll.u32 %s128_s8, 4 }
  0x51   :  { %s119_s16 = sshll.u32 %s117_s14, 4  ;;  %s131_s17 = sadd.s32 %s754_s15, %s129_s9  ;;  %s120_s16 = int_to_ptr.hbm [resolvable:$true] %s119_s16 }
  0x52   :  { %s132_s20 = scalar_lea.hbm %s1619_s2, %s131_s17  ;;  %s957_s21 = sshra.s32 %s120_s16, 4  ;;  %s958_s21 = int_to_ptr.hbm [resolvable:$true] %s957_s21 }
  0x53   :  { %s959_s11 = scalar_lea.hbm %s958_s21, 2  ;;  %p962_p7 = scmp.lt.s32.totalorder %s958_s21, %s1619_s2 }
  0x54   :  { %p960_p6 = scmp.ne.s32.totalorder %s958_s21, %s959_s11  ;;  %p963_p8 = scmp.lt.s32.totalorder %s1365_s0, %s959_s11 }
  0x56   :  { %p964_p9 = por %p963_p8, %p962_p7 }
  0x58   :  { %p965_p10 = pnand %p964_p9, %p960_p6 }
  0x5a   :  { %968 = shalt.err (!%p965_p10)  }
  0x5b   :  { %126 = dma.hbm_to_vmem [thread:$0]  %s120_s16, 32, %s122_s6, [#allocation4], %s1285_s30, %s1285_s30, %s1286_s7 }
  0x5c   :  { %s134_s10 = sshll.u32 %s132_s20, 4  ;;  %s146_s28 = sshrl.u32 %s1419_s24, 3  ;;  %s135_s10 = int_to_ptr.hbm [resolvable:$true] %s134_s10 }
  0x5d   :  { %s147_s29 = sand.u32 7, %s1419_s24   ;;  %s981_s1 = sshra.s32 %s135_s10, 4  ;;  %s982_s1 = int_to_ptr.hbm [resolvable:$true] %s981_s1 }
  0x5e   :  { %s983_s8 = scalar_lea.hbm %s982_s1, 2  ;;  %p986_p12 = scmp.lt.s32.totalorder %s982_s1, %s1619_s2 }
  0x5f   :  { %p984_p11 = scmp.ne.s32.totalorder %s982_s1, %s983_s8  ;;  %p987_p13 = scmp.lt.s32.totalorder %s1365_s0, %s983_s8 }
  0x61   :  { %p988_p0 = por %p987_p13, %p986_p12 }
  0x63   :  { %p989_p1 = pnand %p988_p0, %p984_p11 }
  0x65   :  { %992 = shalt.err (!%p989_p1)  }
  0x66   :  { %141 = dma.hbm_to_vmem [thread:$0]  %s135_s10, 32, %s137_s23, [#allocation4 + $0x2], %s1285_s30, %s1285_s30, %s1286_s7 }
  0x67   :  { %s756_s6 = sshll.u32 %s146_s28, 4  ;;  %s161_s12 = sshrl.u32 %s1424_s27, 3 }
  0x68   :  { %s149_s24 = sadd.s32 %s756_s6, %s147_s29  ;;  %s162_s16 = sand.u32 7, %s1424_s27  }
  0x69   :  { %s150_s15 = scalar_lea.hbm %s1619_s2, %s149_s24  ;;  %s758_s18 = sshll.u32 %s161_s12, 4 }
  0x6a   :  { %s152_s17 = sshll.u32 %s150_s15, 4  ;;  %s164_s19 = sadd.s32 %s758_s18, %s162_s16  ;;  %s153_s17 = int_to_ptr.hbm [resolvable:$true] %s152_s17 }
  0x6b   :  { %s1005_s20 = sshra.s32 %s153_s17, 4  ;;  %s1006_s20 = int_to_ptr.hbm [resolvable:$true] %s1005_s20 }
  0x6c   :  { %s1007_s21 = scalar_lea.hbm %s1006_s20, 2  ;;  %p1010_p3 = scmp.lt.s32.totalorder %s1006_s20, %s1619_s2 }
  0x6d   :  { %p1008_p2 = scmp.ne.s32.totalorder %s1006_s20, %s1007_s21  ;;  %p1011_p4 = scmp.lt.s32.totalorder %s1365_s0, %s1007_s21 }
  0x6f   :  { %p1012_p5 = por %p1011_p4, %p1010_p3 }
  0x71   :  { %p1013_p6 = pnand %p1012_p5, %p1008_p2 }
  0x73   :  { %1016 = shalt.err (!%p1013_p6)  }
  0x74   :  { %159 = dma.hbm_to_vmem [thread:$0]  %s153_s17, 32, %s155_s26, [#allocation4], %s1285_s30, %s1285_s30, %s1286_s7 }
  0x75   :  { %s165_s25 = scalar_lea.hbm %s1619_s2, %s164_s19  ;;  %s1291_s28 = smov [#allocation3 + $0x3]  }
  0x76   :  { %s167_s10 = sshll.u32 %s165_s25, 4  ;;  %s169_s29 = sshll.u32 %s1291_s28, 4  ;;  %s168_s10 = int_to_ptr.hbm [resolvable:$true] %s167_s10  ;;  %s170_s29 = int_to_ptr.vmem [resolvable:$true] %s169_s29 }
  0x77   :  { %s1029_s1 = sshra.s32 %s168_s10, 4  ;;  %s1030_s1 = int_to_ptr.hbm [resolvable:$true] %s1029_s1 }
  0x78   :  { %s1031_s8 = scalar_lea.hbm %s1030_s1, 2  ;;  %p1034_p8 = scmp.lt.s32.totalorder %s1030_s1, %s1619_s2 }
  0x79   :  { %p1032_p7 = scmp.ne.s32.totalorder %s1030_s1, %s1031_s8  ;;  %p1035_p9 = scmp.lt.s32.totalorder %s1365_s0, %s1031_s8 }
  0x7b   :  { %p1036_p10 = por %p1035_p9, %p1034_p8 }
  0x7d   :  { %p1037_p11 = pnand %p1036_p10, %p1032_p7 }
  0x7f   :  { %1040 = shalt.err (!%p1037_p11)  }
  0x80   :  { %174 = dma.hbm_to_vmem [thread:$0]  %s168_s10, 32, %s170_s29, [#allocation4 + $0x2], %s1285_s30, %s1285_s30, %s1286_s7 }
  0x81   :  { %s759_s26 = sld [smem:[#allocation6 + $0x4]]  ;;  %s1292_s6 = smov [#allocation2 + $0x4]  }
  0x82   :  { %s1475_s24 = sshll.u32 %s1292_s6, 4  ;;  %s761_s12 = sld [smem:[#allocation7 + $0x4]]  ;;  %s188_s24 = int_to_ptr.vmem [resolvable:$true] %s1475_s24 }
  0x83   :  { %s1293_s13 = smov [#allocation3 + $0x4]   ;;  %s1480_s15 = sld [smem:[#allocation6 + $0x5]] }
  0x84   :  { %s1478_s14 = sshll.u32 %s1293_s13, 4  ;;  %s1294_s16 = smov [#allocation2 + $0x5]   ;;  %s203_s14 = int_to_ptr.vmem [resolvable:$true] %s1478_s14 }
  0x85   :  { %s1483_s17 = sshll.u32 %s1294_s16, 4  ;;  %s1485_s18 = sld [smem:[#allocation7 + $0x5]]  ;;  %s221_s17 = int_to_ptr.vmem [resolvable:$true] %s1483_s17 }
  0x87   :  { %s179_s19 = sshrl.u32 %s759_s26, 3  ;;  %s180_s20 = sand.u32 7, %s759_s26  }
  0x88   :  { %s760_s21 = sshll.u32 %s179_s19, 4  ;;  %s194_s11 = sshrl.u32 %s761_s12, 3 }
  0x89   :  { %s182_s23 = sadd.s32 %s760_s21, %s180_s20  ;;  %s195_s27 = sand.u32 7, %s761_s12  }
  0x8a   :  { %s183_s10 = scalar_lea.hbm %s1619_s2, %s182_s23  ;;  %s762_s28 = sshll.u32 %s194_s11, 4 }
  0x8b   :  { %s185_s29 = sshll.u32 %s183_s10, 4  ;;  %s197_s1 = sadd.s32 %s762_s28, %s195_s27  ;;  %s186_s29 = int_to_ptr.hbm [resolvable:$true] %s185_s29 }
  0x8c   :  { %s198_s9 = scalar_lea.hbm %s1619_s2, %s197_s1  ;;  %s1053_s6 = sshra.s32 %s186_s29, 4  ;;  %s1054_s6 = int_to_ptr.hbm [resolvable:$true] %s1053_s6 }
  0x8d   :  { %s1055_s26 = scalar_lea.hbm %s1054_s6, 2  ;;  %p1058_p13 = scmp.lt.s32.totalorder %s1054_s6, %s1619_s2 }
  0x8e   :  { %p1056_p12 = scmp.ne.s32.totalorder %s1054_s6, %s1055_s26  ;;  %p1059_p0 = scmp.lt.s32.totalorder %s1365_s0, %s1055_s26 }
  0x90   :  { %p1060_p1 = por %p1059_p0, %p1058_p13 }
  0x92   :  { %p1061_p2 = pnand %p1060_p1, %p1056_p12 }
  0x94   :  { %1064 = shalt.err (!%p1061_p2)  }
  0x95   :  { %192 = dma.hbm_to_vmem [thread:$0]  %s186_s29, 32, %s188_s24, [#allocation4], %s1285_s30, %s1285_s30, %s1286_s7 }
  0x96   :  { %s200_s12 = sshll.u32 %s198_s9, 4  ;;  %s212_s19 = sshrl.u32 %s1480_s15, 3  ;;  %s201_s12 = int_to_ptr.hbm [resolvable:$true] %s200_s12 }
  0x97   :  { %s213_s20 = sand.u32 7, %s1480_s15   ;;  %s1077_s21 = sshra.s32 %s201_s12, 4  ;;  %s1078_s21 = int_to_ptr.hbm [resolvable:$true] %s1077_s21 }
  0x98   :  { %s1079_s11 = scalar_lea.hbm %s1078_s21, 2  ;;  %p1082_p4 = scmp.lt.s32.totalorder %s1078_s21, %s1619_s2 }
  0x99   :  { %p1080_p3 = scmp.ne.s32.totalorder %s1078_s21, %s1079_s11  ;;  %p1083_p5 = scmp.lt.s32.totalorder %s1365_s0, %s1079_s11 }
  0x9b   :  { %p1084_p6 = por %p1083_p5, %p1082_p4 }
  0x9d   :  { %p1085_p7 = pnand %p1084_p6, %p1080_p3 }
  0x9f   :  { %1088 = shalt.err (!%p1085_p7)  }
  0xa0   :  { %207 = dma.hbm_to_vmem [thread:$0]  %s201_s12, 32, %s203_s14, [#allocation4 + $0x2], %s1285_s30, %s1285_s30, %s1286_s7 }
  0xa1   :  { %s764_s24 = sshll.u32 %s212_s19, 4  ;;  %s227_s22 = sshrl.u32 %s1485_s18, 3 }
  0xa2   :  { %s215_s15 = sadd.s32 %s764_s24, %s213_s20  ;;  %s228_s29 = sand.u32 7, %s1485_s18  }
  0xa3   :  { %s216_s28 = scalar_lea.hbm %s1619_s2, %s215_s15  ;;  %s766_s8 = sshll.u32 %s227_s22, 4 }
  0xa4   :  { %s218_s1 = sshll.u32 %s216_s28, 4  ;;  %s230_s3 = sadd.s32 %s766_s8, %s228_s29  ;;  %s219_s1 = int_to_ptr.hbm [resolvable:$true] %s218_s1 }
  0xa5   :  { %s1101_s9 = sshra.s32 %s219_s1, 4  ;;  %s1102_s9 = int_to_ptr.hbm [resolvable:$true] %s1101_s9 }
  0xa6   :  { %s1103_s6 = scalar_lea.hbm %s1102_s9, 2  ;;  %p1106_p9 = scmp.lt.s32.totalorder %s1102_s9, %s1619_s2 }
  0xa7   :  { %p1104_p8 = scmp.ne.s32.totalorder %s1102_s9, %s1103_s6  ;;  %p1107_p10 = scmp.lt.s32.totalorder %s1365_s0, %s1103_s6 }
  0xa9   :  { %p1108_p11 = por %p1107_p10, %p1106_p9 }
  0xab   :  { %p1109_p12 = pnand %p1108_p11, %p1104_p8 }
  0xad   :  { %1112 = shalt.err (!%p1109_p12)  }
  0xae   :  { %225 = dma.hbm_to_vmem [thread:$0]  %s219_s1, 32, %s221_s17, [#allocation4], %s1285_s30, %s1285_s30, %s1286_s7 }
  0xaf   :  { %s231_s16 = scalar_lea.hbm %s1619_s2, %s230_s3  ;;  %s1295_s19 = smov [#allocation3 + $0x5]  }
  0xb0   :  { %s233_s12 = sshll.u32 %s231_s16, 4  ;;  %s235_s20 = sshll.u32 %s1295_s19, 4  ;;  %s234_s12 = int_to_ptr.hbm [resolvable:$true] %s233_s12  ;;  %s236_s20 = int_to_ptr.vmem [resolvable:$true] %s235_s20 }
  0xb1   :  { %s1125_s21 = sshra.s32 %s234_s12, 4  ;;  %s1126_s21 = int_to_ptr.hbm [resolvable:$true] %s1125_s21 }
  0xb2   :  { %s1127_s11 = scalar_lea.hbm %s1126_s21, 2  ;;  %p1130_p0 = scmp.lt.s32.totalorder %s1126_s21, %s1619_s2 }
  0xb3   :  { %p1128_p13 = scmp.ne.s32.totalorder %s1126_s21, %s1127_s11  ;;  %p1131_p1 = scmp.lt.s32.totalorder %s1365_s0, %s1127_s11 }
  0xb5   :  { %p1132_p2 = por %p1131_p1, %p1130_p0 }
  0xb7   :  { %p1133_p3 = pnand %p1132_p2, %p1128_p13 }
  0xb9   :  { %1136 = shalt.err (!%p1133_p3)  }
  0xba   :  { %240 = dma.hbm_to_vmem [thread:$0]  %s234_s12, 32, %s236_s20, [#allocation4 + $0x2], %s1285_s30, %s1285_s30, %s1286_s7 }
  0xbb   :  { %s767_s17 = sld [smem:[#allocation6 + $0x6]]  ;;  %s1296_s24 = smov [#allocation2 + $0x6]  }
  0xbc   :  { %s1536_s15 = sshll.u32 %s1296_s24, 4  ;;  %s769_s22 = sld [smem:[#allocation7 + $0x6]]  ;;  %s254_s15 = int_to_ptr.vmem [resolvable:$true] %s1536_s15 }
  0xbd   :  { %s1297_s25 = smov [#allocation3 + $0x6]   ;;  %s1541_s28 = sld [smem:[#allocation6 + $0x7]] }
  0xbe   :  { %s1539_s10 = sshll.u32 %s1297_s25, 4  ;;  %s1298_s29 = smov [#allocation2 + $0x7]   ;;  %s269_s10 = int_to_ptr.vmem [resolvable:$true] %s1539_s10 }
  0xbf   :  { %s1544_s1 = sshll.u32 %s1298_s29, 4  ;;  %s1546_s8 = sld [smem:[#allocation7 + $0x7]]  ;;  %s287_s1 = int_to_ptr.vmem [resolvable:$true] %s1544_s1 }
  0xc1   :  { %s245_s3 = sshrl.u32 %s767_s17, 3  ;;  %s246_s9 = sand.u32 7, %s767_s17  }
  0xc2   :  { %s768_s6 = sshll.u32 %s245_s3, 4  ;;  %s260_s26 = sshrl.u32 %s769_s22, 3 }
  0xc3   :  { %s248_s14 = sadd.s32 %s768_s6, %s246_s9  ;;  %s261_s18 = sand.u32 7, %s769_s22  }
  0xc4   :  { %s249_s12 = scalar_lea.hbm %s1619_s2, %s248_s14  ;;  %s770_s19 = sshll.u32 %s260_s26, 4 }
  0xc5   :  { %s251_s20 = sshll.u32 %s249_s12, 4  ;;  %s263_s21 = sadd.s32 %s770_s19, %s261_s18  ;;  %s252_s20 = int_to_ptr.hbm [resolvable:$true] %s251_s20 }
  0xc6   :  { %s264_s27 = scalar_lea.hbm %s1619_s2, %s263_s21  ;;  %s1149_s24 = sshra.s32 %s252_s20, 4  ;;  %s1150_s24 = int_to_ptr.hbm [resolvable:$true] %s1149_s24 }
  0xc7   :  { %s1151_s17 = scalar_lea.hbm %s1150_s24, 2  ;;  %p1154_p5 = scmp.lt.s32.totalorder %s1150_s24, %s1619_s2 }
  0xc8   :  { %p1152_p4 = scmp.ne.s32.totalorder %s1150_s24, %s1151_s17  ;;  %p1155_p6 = scmp.lt.s32.totalorder %s1365_s0, %s1151_s17 }
  0xca   :  { %p1156_p7 = por %p1155_p6, %p1154_p5 }
  0xcc   :  { %p1157_p8 = pnand %p1156_p7, %p1152_p4 }
  0xce   :  { %1160 = shalt.err (!%p1157_p8)  }
  0xcf   :  { %258 = dma.hbm_to_vmem [thread:$0]  %s252_s20, 32, %s254_s15, [#allocation4], %s1285_s30, %s1285_s30, %s1286_s7 }
  0xd0   :  { %s266_s22 = sshll.u32 %s264_s27, 4  ;;  %s278_s3 = sshrl.u32 %s1541_s28, 3  ;;  %s267_s22 = int_to_ptr.hbm [resolvable:$true] %s266_s22 }
  0xd1   :  { %s279_s9 = sand.u32 7, %s1541_s28   ;;  %s1173_s6 = sshra.s32 %s267_s22, 4  ;;  %s1174_s6 = int_to_ptr.hbm [resolvable:$true] %s1173_s6 }
  0xd2   :  { %s1175_s26 = scalar_lea.hbm %s1174_s6, 2  ;;  %p1178_p10 = scmp.lt.s32.totalorder %s1174_s6, %s1619_s2 }
  0xd3   :  { %p1176_p9 = scmp.ne.s32.totalorder %s1174_s6, %s1175_s26  ;;  %p1179_p11 = scmp.lt.s32.totalorder %s1365_s0, %s1175_s26 }
  0xd5   :  { %p1180_p12 = por %p1179_p11, %p1178_p10 }
  0xd7   :  { %p1181_p13 = pnand %p1180_p12, %p1176_p9 }
  0xd9   :  { %1184 = shalt.err (!%p1181_p13)  }
  0xda   :  { %273 = dma.hbm_to_vmem [thread:$0]  %s267_s22, 32, %s269_s10, [#allocation4 + $0x2], %s1285_s30, %s1285_s30, %s1286_s7 }
  0xdb   :  { %s772_s15 = sshll.u32 %s278_s3, 4  ;;  %s293_s13 = sshrl.u32 %s1546_s8, 3 }
  0xdc   :  { %s281_s28 = sadd.s32 %s772_s15, %s279_s9  ;;  %s294_s20 = sand.u32 7, %s1546_s8  }
  0xdd   :  { %s282_s19 = scalar_lea.hbm %s1619_s2, %s281_s28  ;;  %s774_s11 = sshll.u32 %s293_s13, 4 }
  0xde   :  { %s284_s21 = sshll.u32 %s282_s19, 4  ;;  %s296_s23 = sadd.s32 %s774_s11, %s294_s20  ;;  %s285_s21 = int_to_ptr.hbm [resolvable:$true] %s284_s21 }
  0xdf   :  { %s1197_s27 = sshra.s32 %s285_s21, 4  ;;  %s1198_s27 = int_to_ptr.hbm [resolvable:$true] %s1197_s27 }
  0xe0   :  { %s1199_s24 = scalar_lea.hbm %s1198_s27, 2  ;;  %p1202_p1 = scmp.lt.s32.totalorder %s1198_s27, %s1619_s2 }
  0xe1   :  { %p1200_p0 = scmp.ne.s32.totalorder %s1198_s27, %s1199_s24  ;;  %p1203_p2 = scmp.lt.s32.totalorder %s1365_s0, %s1199_s24 }
  0xe3   :  { %p1204_p3 = por %p1203_p2, %p1202_p1 }
  0xe5   :  { %p1205_p4 = pnand %p1204_p3, %p1200_p0 }
  0xe7   :  { %1208 = shalt.err (!%p1205_p4)  }
  0xe8   :  { %291 = dma.hbm_to_vmem [thread:$0]  %s285_s21, 32, %s287_s1, [#allocation4], %s1285_s30, %s1285_s30, %s1286_s7 }
  0xe9   :  { %s297_s29 = scalar_lea.hbm %s1619_s2, %s296_s23  ;;  %s1299_s3 = smov [#allocation3 + $0x7]  }
  0xea   :  { %s299_s22 = sshll.u32 %s297_s29, 4  ;;  %s301_s9 = sshll.u32 %s1299_s3, 4  ;;  %s300_s22 = int_to_ptr.hbm [resolvable:$true] %s299_s22  ;;  %s302_s9 = int_to_ptr.vmem [resolvable:$true] %s301_s9 }
  0xeb   :  { %s1221_s6 = sshra.s32 %s300_s22, 4  ;;  %s1222_s6 = int_to_ptr.hbm [resolvable:$true] %s1221_s6 }
  0xec   :  { %s1223_s26 = scalar_lea.hbm %s1222_s6, 2  ;;  %p1226_p6 = scmp.lt.s32.totalorder %s1222_s6, %s1619_s2 }
  0xed   :  { %p1224_p5 = scmp.ne.s32.totalorder %s1222_s6, %s1223_s26  ;;  %p1227_p7 = scmp.lt.s32.totalorder %s1365_s0, %s1223_s26 }
  0xef   :  { %p1228_p8 = por %p1227_p7, %p1226_p6 }
  0xf1   :  { %p1229_p9 = pnand %p1228_p8, %p1224_p5 }
  0xf3   :  { %1232 = shalt.err (!%p1229_p9)  }
  0xf4   :  { %306 = dma.hbm_to_vmem [thread:$0]  %s300_s22, 32, %s302_s9, [#allocation4 + $0x2], %s1285_s30, %s1285_s30, %s1286_s7 }
  0xf5   :  { %1273 = dma.done.wait [#allocation4], 256 }
  0xf6   :  { %1274 = vsyncadd [#allocation4], 4294967040 }
  0xf7   :  { %1275 = dma.done.wait [#allocation4 + $0x2], 256 }
  0xf8   :  { %1276 = vsyncadd [#allocation4 + $0x2], 4294967040  ;;  %v1300_v2 = vmov 0   ;;  %v317_v3 = vld [vmem:[%s1621_s4] sm:$0xff]  ;;  %v345_v4 = vand.u32 4294901760, %v1354_v0  ;;  %v491_v9 = vand.u32 4294901760, %v1356_v1  ;;  %v318_v14 = vlaneseq }
  0xf9   :  { %810 = vset.pattern.permute.xlu0 %v1300_v2  ;;  %vm326_vm0 = vcmask 64512   ;;  %v1301_v17 = vmov 0.0   ;;  %v313_v44 = vld [vmem:[#allocation2] sm:$0xff]  ;;  %v314_v45 = vld [vmem:[#allocation2 + $0x8] sm:$0xff]  ;;  %s1302_s2 = smov [#allocation11]   ;;  %s660_s7 = sshll.u32 %s1622_s5, 4  ;;  %s661_s7 = int_to_ptr.hbm [resolvable:$true] %s660_s7 }
  0xfa   :  { %321 = vperm.xlu0 %810, %v317_v3   ;;  %v372_v5 = vsub.f32 %v1354_v0, %v345_v4  ;;  %422 = vmatpush.msra.mxu3 %v345_v4  ;;  %v518_v10 = vsub.f32 %v1356_v1, %v491_v9  ;;  %v1604_v15 = vand.u32 127, %v318_v14  ;;  %v315_v52 = vld [vmem:[#allocation3] sm:$0xff]  ;;  %v316_v53 = vld [vmem:[#allocation3 + $0x8] sm:$0xff]  ;;  %s658_s4 = sshll.u32 %s1302_s2, 4  ;;  %vm651_vm4 = vcmask 57344   ;;  %s659_s4 = int_to_ptr.vmem [resolvable:$true] %s658_s4 }
  0xfb   :  { %346 = vmatpush.msra.mxu0 %v345_v4 }
  0xfc   :  { %v373_v6 = vand.u32 4294901760, %v372_v5  ;;  %399 = vmatpush.msra.mxu2 %v372_v5  ;;  %v519_v11 = vand.u32 4294901760, %v518_v10 }
  0xfe   :  { %v374_v7 = vsub.f32 %v372_v5, %v373_v6  ;;  %448 = vmatpush.msrb.mxu0 %v373_v6  ;;  %492 = vmatpush.msrb.mxu2 %v491_v9  ;;  %v520_v12 = vsub.f32 %v518_v10, %v519_v11 }
 0x100   :  { %v375_v8 = vand.u32 4294901760, %v374_v7  ;;  %v521_v13 = vand.u32 4294901760, %v520_v12 }
 0x102   :  { %376 = vmatpush.msra.mxu1 %v375_v8  ;;  %522 = vmatpush.msrb.mxu3 %v521_v13 }
 0x104   :  { %470 = vmatpush.msrb.mxu1 %v345_v4 }
 0x16c   :  { %v322_v16 = vpop.permute.xlu0 %321 }
 0x16d   :  { %vm323_vm1 = vcmp.eq.s32.totalorder %v322_v16, %v1604_v15 }
 0x16e   :  { %v775_v18 = vsel %vm323_vm1, 1.0, %v1301_v17 }
 0x16f   :  { %776 = vmatmul.msk.f32.vlgmr.msra.gmra.mxu1 %vm326_vm0, %v775_v18  ;;  %v328_v19 = vsel %vm326_vm0, %v775_v18, 0 }
 0x170   :  { %v348_v20 = vsub.f32 %v328_v19, %v328_v19  ;;  %568 = vmatpush.msra.mxu1 %v491_v9 }
 0x172   :  { %402 = vmatmul.f32.vlgmr.msra.gmra.mxu2 %v348_v20  ;;  %v349_v21 = vand.u32 4294901760, %v348_v20 }
 0x173   :  { %594 = vmatpush.msra.mxu2 %v519_v11 }
 0x174   :  { %426 = vmatmul.f32.vlgmr.msra.gmra.mxu3 %v349_v21  ;;  %v350_v22 = vsub.f32 %v348_v20, %v349_v21 }
 0x175   :  { %616 = vmatpush.msra.mxu3 %v491_v9 }
 0x176   :  { %v351_v23 = vand.u32 4294901760, %v350_v22 }
 0x177   :  { %778 = vmatmul.msk.f32.vlgmr.msrb.gmra.mxu1 %vm326_vm0, %v775_v18 }
 0x178   :  { %352 = vmatmul.f32.vlgmr.msra.gmra.mxu0 %v351_v23 }
 0x179   :  { %545 = vmatpush.msra.mxu0 %v518_v10 }
 0x17a   :  { %498 = vmatmul.f32.vlgmr.msrb.gmra.mxu2 %v351_v23 }
 0x17c   :  { %779 = vmatmul.msk.f32.vlgmr.msrb.gmra.mxu3 %vm326_vm0, %v775_v18 }
 0x17f   :  { %572 = vmatmul.f32.vlgmr.msra.gmra.mxu1 %v349_v21 }
 0x180   :  { %777 = vmatmul.msk.f32.vlgmr.msrb.gmra.mxu0 %vm326_vm0, %v775_v18 }
 0x182   :  { %780 = vmatmul.msk.f32.vlgmr.msra.gmra.mxu2 %vm326_vm0, %v775_v18 }
 0x184   :  { %781 = vmatmul.msk.f32.vlgmr.msra.gmra.mxu3 %vm326_vm0, %v775_v18 }
 0x188   :  { %548 = vmatmul.f32.vlgmr.msra.gmra.mxu0 %v348_v20 }
 0x1ec   :  { %v379_v24 = vpop.f32.mrf.mxu1 }
 0x1f4   :  { %v473_v29 = vpop.f32.mrf.mxu1 }
 0x1f5   :  { %v353_v25 = vpop.f32.mrf.mxu0  ;;  %v403_v26 = vpop.f32.mrf.mxu2 }
 0x1f6   :  { %v380_v28 = vadd.f32 %v379_v24, %v353_v25 }
 0x1f7   :  { %v427_v27 = vpop.f32.mrf.mxu3 }
 0x1f8   :  { %v404_v32 = vadd.f32 %v403_v26, %v380_v28 }
 0x1fa   :  { %v428_v34 = vadd.f32 %v427_v27, %v404_v32 }
 0x1fc   :  { %v573_v39 = vpop.f32.mrf.mxu1 }
 0x1fd   :  { %v451_v30 = vpop.f32.mrf.mxu0  ;;  %v499_v31 = vpop.f32.mrf.mxu2 }
 0x1fe   :  { %v452_v37 = vadd.f32 %v451_v30, %v428_v34 }
 0x1ff   :  { %v525_v33 = vpop.f32.mrf.mxu3 }
 0x200   :  { %v526_v35 = vadd.f32 %v525_v33, %v499_v31  ;;  %v474_v42 = vadd.f32 %v473_v29, %v452_v37 }
 0x202   :  { %v622_v48 = vmul.f32 %v474_v42, %v313_v44  ;;  %v626_v50 = vmul.f32 %v474_v42, %v314_v45 }
 0x205   :  { %v549_v36 = vpop.f32.mrf.mxu0  ;;  %v597_v41 = vpop.f32.mrf.mxu2 }
 0x206   :  { %v550_v38 = vadd.f32 %v549_v36, %v526_v35 }
 0x207   :  { %v619_v46 = vpop.f32.mrf.mxu3 }
 0x208   :  { %v574_v40 = vadd.f32 %v573_v39, %v550_v38 }
 0x20a   :  { %v598_v43 = vadd.f32 %v597_v41, %v574_v40 }
 0x20c   :  { %v620_v47 = vadd.f32 %v619_v46, %v598_v43 }
 0x20e   :  { %v623_v49 = vmul.f32 %v620_v47, %v314_v45  ;;  %v627_v51 = vmul.f32 %v620_v47, %v313_v44 }
 0x210   :  { %v624_v54 = vsub.f32 %v622_v48, %v623_v49  ;;  %v628_v55 = vadd.f32 %v627_v51, %v626_v50 }
 0x212   :  { %v625_v56 = vsub.f32 %v624_v54, %v315_v52  ;;  %v629_v57 = vsub.f32 %v628_v55, %v316_v53 }
 0x214   :  { %v630_v58 = vmul.f32 %v625_v56, %v625_v56  ;;  %v631_v59 = vmul.f32 %v629_v57, %v629_v57 }
 0x216   :  { %v632_v60 = vadd.f32 %v631_v59, %v630_v58 }
 0x218   :  { %633 = vadd.xlane.f32.xlu0 %v632_v60 }
 0x28b   :  { %v634_v61 = vpop.xlane.xlu0 %633 }
 0x28c   :  { %811 = vrsqrt.f32 %v634_v61  ;;  %vm642_vm2 = vcmp.eq.f32.partialorder %v634_v61, inf  ;;  %v645_v5 = vand.u32 2147483648, %v634_v61  ;;  %vm644_vm3 = vcmp.eq.f32.partialorder %v634_v61, 0.0 }
 0x292   :  { %v812_v62 = vpop.eup %811 }
 0x293   :  { %v636_v63 = vmul.f32 %v812_v62, %v634_v61 }
 0x295   :  { %v637_v0 = vmul.f32 %v812_v62, %v636_v63 }
 0x297   :  { %v638_v1 = vmul.f32 0.5, %v637_v0 }
 0x299   :  { %v639_v2 = vsub.f32 1.5, %v638_v1 }
 0x29b   :  { %v640_v3 = vmul.f32 %v812_v62, %v639_v2 }
 0x29d   :  { %v641_v4 = vmul.f32 %v640_v3, %v634_v61 }
 0x29f   :  { %v643_v6 = vsel %vm642_vm2, %v634_v61, %v641_v4 }
 0x2a0   :  { %v646_v7 = vsel %vm644_vm3, %v645_v5, %v643_v6 }
 0x2a1   :  { %v647_v8 = vsub.f32 0.0, %v646_v7 }
 0x2a3   :  { %v649_v9 = vperm.slane %v647_v8, %v1604_v15 }
 0x2a5   :  { %652 = vst.msk [vmem:[#allocation11] sm:$0x1] %vm651_vm4, %v649_v9 }
 0x2a6   :  { %663 = dma.vmem_to_hbm [thread:$0]  %s659_s4, 16, %s661_s7, [#allocation10]  }
 0x2a7   :  { %1277 = dma.done.wait [#allocation10], 16  }
 0x2a8   :  { %1278 = vsyncadd [#allocation10], 4294967280 }
 0x2a9   :  { %668 = vsyncpa [#allocation9], 1 }
 0x2aa   :  { %669 = vsyncpa [#allocation10], 1 }
 0x2ab   :  { %670 = vsyncmov [#allocation4] }
 0x2ae   :  { %s671_s28 = vpop.sfrf %670 }
 0x2af   :  { %p782_p10 = scmp.ne.s32.totalorder %s671_s28, 0 }
 0x2b1   :  { %675 = shalt.err (%p782_p10)  }
 0x2b2   :  { %677 = vsyncmov [#allocation4 + $0x1] }
 0x2b5   :  { %s678_s13 = vpop.sfrf %677 }
 0x2b6   :  { %p783_p11 = scmp.ne.s32.totalorder %s678_s13, 0 }
 0x2b8   :  { %682 = shalt.err (%p783_p11)  }
 0x2b9   :  { %684 = vsyncmov [#allocation4 + $0x2] }
 0x2bc   :  { %s685_s5 = vpop.sfrf %684 }
 0x2bd   :  { %p784_p12 = scmp.ne.s32.totalorder %s685_s5, 0 }
 0x2bf   :  { %689 = shalt.err (%p784_p12)  }
 0x2c0   :  { %691 = vsyncmov [#allocation4 + $0x3] }
 0x2c3   :  { %s692_s16 = vpop.sfrf %691 }
 0x2c4   :  { %p785_p13 = scmp.ne.s32.totalorder %s692_s16, 0 }
 0x2c6   :  { %696 = shalt.err (%p785_p13)  }

</bundles_post_ra>
